<compile_context>
chip_gen: v7x
topology: tpu7x:2x2x1
jax: 0.10.0
libtpu: 0.0.40
codegen_flags: <defaults>
</compile_context>

<pallas_src>
import numpy as np
import jax
import jax.numpy as jnp
from jax.experimental import pallas as pl
from jax.experimental.pallas import tpu as pltpu

LAYERS = ((32, 8, 4), (64, 4, 2), (64, 3, 1))   # (Cout, kernel, stride) -- matches the PyTorch module


def _conv_out(size, k, s):
    return (size - (k - 1) - 1) // s + 1


def _round_up(x, m):
    return ((x + m - 1) // m) * m


# ----------------------------- fused Pallas kernel ---------------------------
def _fused_cnn_kernel(p1_ref, w1_ref, b1_ref, sel2_ref, w2_ref, b2_ref,
                      sel3_ref, w3_ref, b3_ref, out_ref):
    f32, bf16 = jnp.float32, jnp.bfloat16

    # conv1: pre-extracted patches -> one (n1, K1) x (K1, C1) bf16 MXU matmul, f32 accumulate.
    a1 = jnp.dot(p1_ref[0], w1_ref[...], preferred_element_type=f32)
    a1 = jnp.maximum(a1 + b1_ref[...], 0.0).astype(bf16)            # (n1, C1)

    def conv_taps(act, sel_ref, w_ref, b_ref, n_valid):
        # act: (rows_in, Cin) bf16.  sel_ref: (taps*rows_blk, rows_in) 0/1 bf16.
        # w_ref: (taps, Cin, Cout) bf16.  Returns relu(conv + bias): (n_valid, Cout) f32.
        taps = w_ref.shape[0]
        rows_blk = sel_ref.shape[0] // taps          # per-tap block, padded to multiple of 8
        acc = None
        for t in range(taps):
            # Exact row gather via a one-hot matmul (keeps the whole layer on the MXU).
            rows = jnp.dot(sel_ref[t * rows_blk:(t + 1) * rows_blk, :], act,
                           preferred_element_type=f32).astype(bf16)
            part = jnp.dot(rows, w_ref[t], preferred_element_type=f32)
            acc = part if acc is None else acc + part
        return jnp.maximum(acc + b_ref[...], 0.0)[:n_valid, :]

    a2 = conv_taps(a1, sel2_ref, w2_ref, b2_ref, sel3_ref.shape[1]).astype(bf16)   # (n2, C2)
    out_ref[0] = conv_taps(a2, sel3_ref, w3_ref, b3_ref, out_ref.shape[1])         # (n3, C3)


# ------------------------------ one-time prep --------------------------------
def _selection_matrix(in_h, in_w, k, stride, rows_blk):
    """0/1 matrix S with S[t*rows_blk + (y*ow + x), (stride*y+dy)*in_w + (stride*x+dx)] = 1
    for tap t = dy*k + dx.  (S @ act) stacks, tap-major, the rows of the im2col patch
    matrix; each tap block is padded to rows_blk rows so in-kernel slices stay 8-aligned."""
    oh, ow = _conv_out(in_h, k, stride), _conv_out(in_w, k, stride)
    sel = np.zeros((k * k * rows_blk, in_h * in_w), np.float32)
    for dy in range(k):
        for dx in range(k):
            t = dy * k + dx
            for y in range(oh):
                for x in range(ow):
                    sel[t * rows_blk + y * ow + x,
                        (stride * y + dy) * in_w + (stride * x + dx)] = 1.0
    return jnp.asarray(sel, jnp.bfloat16)


def init_conv_params(key, cout, cin, kh, kw):
    """Deterministic init mimicking PyTorch's default U(-1/sqrt(fan_in), 1/sqrt(fan_in))."""
    kw_key, kb_key = jax.random.split(key)
    fan_in = cin * kh * kw
    bound = 1.0 / float(fan_in) ** 0.5
    w = jax.random.uniform(kw_key, (cout, cin, kh, kw), jnp.float32, -bound, bound)
    b = jax.random.uniform(kb_key, (cout,), jnp.float32, -bound, bound)
    return w, b


def prepare_params(params, input_shape):
    """One-time layout prep: bf16 MXU weight layouts, (1, C) f32 biases, selection matrices."""
    _, h, w = input_shape
    dims = []                                            # per layer: (in_h, in_w, out_h, out_w)
    for (_, k, s) in LAYERS:
        oh, ow = _conv_out(h, k, s), _conv_out(w, k, s)
        dims.append((h, w, oh, ow))
        h, w = oh, ow

    (cw1, cb1), (cw2, cb2), (cw3, cb3) = params
    w1_mat = jnp.transpose(cw1.reshape(cw1.shape[0], -1)).astype(jnp.bfloat16)    # (Cin*k*k, 32)
    w2_taps = jnp.transpose(cw2, (2, 3, 1, 0)).reshape(
        LAYERS[1][1] ** 2, cw2.shape[1], cw2.shape[0]).astype(jnp.bfloat16)       # (16, 32, 64)
    w3_taps = jnp.transpose(cw3, (2, 3, 1, 0)).reshape(
        LAYERS[2][1] ** 2, cw3.shape[1], cw3.shape[0]).astype(jnp.bfloat16)       # (9, 64, 64)
    b1 = cb1.reshape(1, -1).astype(jnp.float32)
    b2 = cb2.reshape(1, -1).astype(jnp.float32)
    b3 = cb3.reshape(1, -1).astype(jnp.float32)

    rows2 = _round_up(dims[1][2] * dims[1][3], 8)
    rows3 = _round_up(dims[2][2] * dims[2][3], 8)
    sel2 = _selection_matrix(dims[1][0], dims[1][1], LAYERS[1][1], LAYERS[1][2], rows2)
    sel3 = _selection_matrix(dims[2][0], dims[2][1], LAYERS[2][1], LAYERS[2][2], rows3)
    return (w1_mat, b1, sel2, w2_taps, b2, sel3, w3_taps, b3), dims


# ------------------------------ forward pass ----------------------------------
def _im2col(x_nhwc, k, stride):
    """conv1 patch extraction on the raw input; feature order (Cin, kh, kw) matches OIHW."""
    n, h, w, c = x_nhwc.shape
    oh, ow = _conv_out(h, k, stride), _conv_out(w, k, stride)
    ih = (jnp.arange(oh) * stride)[:, None] + jnp.arange(k)[None, :]   # (OH, kh)
    iw = (jnp.arange(ow) * stride)[:, None] + jnp.arange(k)[None, :]   # (OW, kw)
    p = x_nhwc[:, ih, :, :]              # (N, OH, kh, W, C)
    p = p[:, :, :, iw, :]                # (N, OH, kh, OW, kw, C)
    p = p.transpose(0, 1, 3, 5, 2, 4)    # (N, OH, OW, C, kh, kw)
    return p.reshape(n, oh * ow, c * k * k)


def cnn_feature_extractor(prep, x_nchw):
    """Forward pass equivalent to CNNFeatureExtractor.forward (single fused Pallas kernel)."""
    (w1_mat, b1, sel2, w2_taps, b2, sel3, w3_taps, b3), dims = prep
    n = x_nchw.shape[0]
    n1 = dims[0][2] * dims[0][3]         # conv1 output positions per image
    n3 = dims[2][2] * dims[2][3]         # conv3 output positions per image
    c3 = w3_taps.shape[2]
    k1, s1 = LAYERS[0][1], LAYERS[0][2]

    x_nhwc = jnp.transpose(x_nchw, (0, 2, 3, 1))
    p1 = _im2col(x_nhwc, k1, s1).astype(jnp.bfloat16)    # (N, n1, Cin*k1*k1)

    out = pl.pallas_call(
        _fused_cnn_kernel,
        out_shape=jax.ShapeDtypeStruct((n, n3, c3), jnp.float32),
        grid=(n,),
        in_specs=[
            pl.BlockSpec((1,) + p1.shape[1:], lambda i: (i, 0, 0)),   # per-image patches
            pl.BlockSpec(w1_mat.shape, lambda i: (0, 0)),
            pl.BlockSpec(b1.shape, lambda i: (0, 0)),
            pl.BlockSpec(sel2.shape, lambda i: (0, 0)),
            pl.BlockSpec(w2_taps.shape, lambda i: (0, 0, 0)),
            pl.BlockSpec(b2.shape, lambda i: (0, 0)),
            pl.BlockSpec(sel3.shape, lambda i: (0, 0)),
            pl.BlockSpec(w3_taps.shape, lambda i: (0, 0, 0)),
            pl.BlockSpec(b3.shape, lambda i: (0, 0)),
        ],
        out_specs=pl.BlockSpec((1, n3, c3), lambda i: (i, 0, 0)),
        compiler_params=pltpu.CompilerParams(dimension_semantics=("parallel",)),
    )(p1, w1_mat, b1, sel2, w2_taps, b2, sel3, w3_taps, b3)

    # PyTorch flattens the NCHW tensor: (N, OH*OW, C) -> (N, C, OH*OW) -> (N, C*OH*OW).
    return jnp.transpose(out, (0, 2, 1)).reshape(n, -1)


# ------------------------------ reference -------------------------------------
def reference_forward(params, x_nchw):
    y = x_nchw
    for (w, b), (_, k, s) in zip(params, LAYERS):
        y = jax.lax.conv_general_dilated(
            y, w, (s, s), "VALID", dimension_numbers=("NCHW", "OIHW", "NCHW"))
        y = jax.nn.relu(y + b[None, :, None, None])
    return y.reshape(y.shape[0], -1)


if __name__ == "__main__":
    key = jax.random.PRNGKey(0)
    k_in, kp1, kp2, kp3 = jax.random.split(key, 4)

    # input_shape = (C, H, W); 44x44 keeps everything small:
    # 44 -> 10 -> 4 -> 2  =>  feature_size = 2*2*64 = 256
    input_shape = (4, 44, 44)
    batch = 2

    x = jax.random.normal(k_in, (batch,) + input_shape, jnp.float32)
    params = [
        init_conv_params(kp1, 32, input_shape[0], 8, 8),
        init_conv_params(kp2, 64, 32, 4, 4),
        init_conv_params(kp3, 64, 64, 3, 3),
    ]

    prep = prepare_params(params, input_shape)          # one-time layout prep
    fwd = jax.jit(lambda inp: cnn_feature_extractor(prep, inp))

    out = jax.block_until_ready(fwd(x))

    feature_size = 2 * 2 * 64
    assert out.shape == (batch, feature_size), out.shape

    # Tight check: XLA conv reference fed the same bf16-rounded inputs/weights.
    params_bf16 = [(w.astype(jnp.bfloat16).astype(jnp.float32), b) for (w, b) in params]
    ref_bf16 = reference_forward(params_bf16, x.astype(jnp.bfloat16).astype(jnp.float32))
    assert jnp.allclose(out, ref_bf16, atol=3e-2, rtol=3e-2), "mismatch vs bf16-rounded reference"

    # Loose check: full-f32 XLA conv reference (tolerance sized for the bf16 MXU path).
    ref = reference_forward(params, x)
    assert jnp.allclose(out, ref, atol=1e-1, rtol=1e-1), "mismatch vs f32 XLA conv reference"

    print("KERNEL_OK")
</pallas_src>

<mosaic_0001>
module attributes {stable_mosaic.version = 11 : i64} {
  func.func @_fused_cnn_kernel(%arg0: i32, %arg1: memref<1x100x256xbf16, #tpu.memory_space<vmem>>, %arg2: memref<256x32xbf16, #tpu.memory_space<vmem>>, %arg3: memref<1x32xf32, #tpu.memory_space<vmem>>, %arg4: memref<256x100xbf16, #tpu.memory_space<vmem>>, %arg5: memref<16x32x64xbf16, #tpu.memory_space<vmem>>, %arg6: memref<1x64xf32, #tpu.memory_space<vmem>>, %arg7: memref<72x16xbf16, #tpu.memory_space<vmem>>, %arg8: memref<9x64x64xbf16, #tpu.memory_space<vmem>>, %arg9: memref<1x64xf32, #tpu.memory_space<vmem>>, %arg10: memref<1x4x64xf32, #tpu.memory_space<vmem>>) attributes {dimension_semantics = [#tpu.dimension_semantics<parallel>], iteration_bounds = array<i64: 2>, scalar_prefetch = 0 : i64, scratch_operands = 0 : i64, tpu.core_type = #tpu.core_type<tc>, window_params = [{transform_indices = @transform_0, window_bounds = array<i64: 1, 100, 256>}, {pipeline_mode = #tpu.pipeline_mode<synchronous>, transform_indices = @transform_1, window_bounds = array<i64: 256, 32>}, {pipeline_mode = #tpu.pipeline_mode<synchronous>, transform_indices = @transform_2, window_bounds = array<i64: 1, 32>}, {pipeline_mode = #tpu.pipeline_mode<synchronous>, transform_indices = @transform_3, window_bounds = array<i64: 256, 100>}, {pipeline_mode = #tpu.pipeline_mode<synchronous>, transform_indices = @transform_4, window_bounds = array<i64: 16, 32, 64>}, {pipeline_mode = #tpu.pipeline_mode<synchronous>, transform_indices = @transform_5, window_bounds = array<i64: 1, 64>}, {pipeline_mode = #tpu.pipeline_mode<synchronous>, transform_indices = @transform_6, window_bounds = array<i64: 72, 16>}, {pipeline_mode = #tpu.pipeline_mode<synchronous>, transform_indices = @transform_7, window_bounds = array<i64: 9, 64, 64>}, {pipeline_mode = #tpu.pipeline_mode<synchronous>, transform_indices = @transform_8, window_bounds = array<i64: 1, 64>}, {transform_indices = @transform_9, window_bounds = array<i64: 1, 4, 64>}]} {
    %c0 = arith.constant 0 : index
    %c0_0 = arith.constant 0 : index
    %c0_1 = arith.constant 0 : index
    %0 = vector.load %arg1[%c0, %c0_0, %c0_1] : memref<1x100x256xbf16, #tpu.memory_space<vmem>>, vector<1x100x256xbf16>
    %1 = vector.shape_cast %0 : vector<1x100x256xbf16> to vector<100x256xbf16>
    %c0_2 = arith.constant 0 : index
    %c0_3 = arith.constant 0 : index
    %2 = vector.load %arg2[%c0_2, %c0_3] : memref<256x32xbf16, #tpu.memory_space<vmem>>, vector<256x32xbf16>
    %cst = arith.constant dense<0.000000e+00> : vector<100x32xf32>
    %3 = tpu.matmul %1, %2, %cst {dimension_numbers = #tpu.dot_dimension_numbers<[1], [0], [0], [1], [0, 0, 1, 1], [], []>} : vector<100x256xbf16>, vector<256x32xbf16>, vector<100x32xf32> -> vector<100x32xf32>
    %c0_4 = arith.constant 0 : index
    %c0_5 = arith.constant 0 : index
    %4 = vector.load %arg3[%c0_4, %c0_5] : memref<1x32xf32, #tpu.memory_space<vmem>>, vector<1x32xf32>
    %5 = vector.broadcast %4 : vector<1x32xf32> to vector<100x32xf32>
    %6 = arith.addf %3, %5 : vector<100x32xf32>
    %cst_6 = arith.constant 0.000000e+00 : f32
    %7 = vector.broadcast %cst_6 : f32 to vector<100x32xf32>
    %8 = arith.maximumf %6, %7 : vector<100x32xf32>
    %9 = arith.truncf %8 : vector<100x32xf32> to vector<100x32xbf16>
    %c0_7 = arith.constant 0 : index
    %c0_8 = arith.constant 0 : index
    %10 = vector.load %arg4[%c0_7, %c0_8] : memref<256x100xbf16, #tpu.memory_space<vmem>>, vector<16x100xbf16>
    %cst_9 = arith.constant dense<0.000000e+00> : vector<16x32xf32>
    %11 = tpu.matmul %10, %9, %cst_9 {dimension_numbers = #tpu.dot_dimension_numbers<[1], [0], [0], [1], [0, 0, 1, 1], [], []>} : vector<16x100xbf16>, vector<100x32xbf16>, vector<16x32xf32> -> vector<16x32xf32>
    %12 = arith.truncf %11 : vector<16x32xf32> to vector<16x32xbf16>
    %c0_10 = arith.constant 0 : index
    %c0_11 = arith.constant 0 : index
    %c0_12 = arith.constant 0 : index
    %13 = vector.load %arg5[%c0_10, %c0_11, %c0_12] : memref<16x32x64xbf16, #tpu.memory_space<vmem>>, vector<1x32x64xbf16>
    %14 = vector.shape_cast %13 : vector<1x32x64xbf16> to vector<32x64xbf16>
    %cst_13 = arith.constant dense<0.000000e+00> : vector<16x64xf32>
    %15 = tpu.matmul %12, %14, %cst_13 {dimension_numbers = #tpu.dot_dimension_numbers<[1], [0], [0], [1], [0, 0, 1, 1], [], []>} : vector<16x32xbf16>, vector<32x64xbf16>, vector<16x64xf32> -> vector<16x64xf32>
    %c16 = arith.constant 16 : index
    %c0_14 = arith.constant 0 : index
    %16 = vector.load %arg4[%c16, %c0_14] : memref<256x100xbf16, #tpu.memory_space<vmem>>, vector<16x100xbf16>
    %cst_15 = arith.constant dense<0.000000e+00> : vector<16x32xf32>
    %17 = tpu.matmul %16, %9, %cst_15 {dimension_numbers = #tpu.dot_dimension_numbers<[1], [0], [0], [1], [0, 0, 1, 1], [], []>} : vector<16x100xbf16>, vector<100x32xbf16>, vector<16x32xf32> -> vector<16x32xf32>
    %18 = arith.truncf %17 : vector<16x32xf32> to vector<16x32xbf16>
    %c1 = arith.constant 1 : index
    %c0_16 = arith.constant 0 : index
    %c0_17 = arith.constant 0 : index
    %19 = vector.load %arg5[%c1, %c0_16, %c0_17] : memref<16x32x64xbf16, #tpu.memory_space<vmem>>, vector<1x32x64xbf16>
    %20 = vector.shape_cast %19 : vector<1x32x64xbf16> to vector<32x64xbf16>
    %cst_18 = arith.constant dense<0.000000e+00> : vector<16x64xf32>
    %21 = tpu.matmul %18, %20, %cst_18 {dimension_numbers = #tpu.dot_dimension_numbers<[1], [0], [0], [1], [0, 0, 1, 1], [], []>} : vector<16x32xbf16>, vector<32x64xbf16>, vector<16x64xf32> -> vector<16x64xf32>
    %22 = arith.addf %15, %21 : vector<16x64xf32>
    %c32 = arith.constant 32 : index
    %c0_19 = arith.constant 0 : index
    %23 = vector.load %arg4[%c32, %c0_19] : memref<256x100xbf16, #tpu.memory_space<vmem>>, vector<16x100xbf16>
    %cst_20 = arith.constant dense<0.000000e+00> : vector<16x32xf32>
    %24 = tpu.matmul %23, %9, %cst_20 {dimension_numbers = #tpu.dot_dimension_numbers<[1], [0], [0], [1], [0, 0, 1, 1], [], []>} : vector<16x100xbf16>, vector<100x32xbf16>, vector<16x32xf32> -> vector<16x32xf32>
    %25 = arith.truncf %24 : vector<16x32xf32> to vector<16x32xbf16>
    %c2 = arith.constant 2 : index
    %c0_21 = arith.constant 0 : index
    %c0_22 = arith.constant 0 : index
    %26 = vector.load %arg5[%c2, %c0_21, %c0_22] : memref<16x32x64xbf16, #tpu.memory_space<vmem>>, vector<1x32x64xbf16>
    %27 = vector.shape_cast %26 : vector<1x32x64xbf16> to vector<32x64xbf16>
    %cst_23 = arith.constant dense<0.000000e+00> : vector<16x64xf32>
    %28 = tpu.matmul %25, %27, %cst_23 {dimension_numbers = #tpu.dot_dimension_numbers<[1], [0], [0], [1], [0, 0, 1, 1], [], []>} : vector<16x32xbf16>, vector<32x64xbf16>, vector<16x64xf32> -> vector<16x64xf32>
    %29 = arith.addf %22, %28 : vector<16x64xf32>
    %c48 = arith.constant 48 : index
    %c0_24 = arith.constant 0 : index
    %30 = vector.load %arg4[%c48, %c0_24] : memref<256x100xbf16, #tpu.memory_space<vmem>>, vector<16x100xbf16>
    %cst_25 = arith.constant dense<0.000000e+00> : vector<16x32xf32>
    %31 = tpu.matmul %30, %9, %cst_25 {dimension_numbers = #tpu.dot_dimension_numbers<[1], [0], [0], [1], [0, 0, 1, 1], [], []>} : vector<16x100xbf16>, vector<100x32xbf16>, vector<16x32xf32> -> vector<16x32xf32>
    %32 = arith.truncf %31 : vector<16x32xf32> to vector<16x32xbf16>
    %c3 = arith.constant 3 : index
    %c0_26 = arith.constant 0 : index
    %c0_27 = arith.constant 0 : index
    %33 = vector.load %arg5[%c3, %c0_26, %c0_27] : memref<16x32x64xbf16, #tpu.memory_space<vmem>>, vector<1x32x64xbf16>
    %34 = vector.shape_cast %33 : vector<1x32x64xbf16> to vector<32x64xbf16>
    %cst_28 = arith.constant dense<0.000000e+00> : vector<16x64xf32>
    %35 = tpu.matmul %32, %34, %cst_28 {dimension_numbers = #tpu.dot_dimension_numbers<[1], [0], [0], [1], [0, 0, 1, 1], [], []>} : vector<16x32xbf16>, vector<32x64xbf16>, vector<16x64xf32> -> vector<16x64xf32>
    %36 = arith.addf %29, %35 : vector<16x64xf32>
    %c64 = arith.constant 64 : index
    %c0_29 = arith.constant 0 : index
    %37 = vector.load %arg4[%c64, %c0_29] : memref<256x100xbf16, #tpu.memory_space<vmem>>, vector<16x100xbf16>
    %cst_30 = arith.constant dense<0.000000e+00> : vector<16x32xf32>
    %38 = tpu.matmul %37, %9, %cst_30 {dimension_numbers = #tpu.dot_dimension_numbers<[1], [0], [0], [1], [0, 0, 1, 1], [], []>} : vector<16x100xbf16>, vector<100x32xbf16>, vector<16x32xf32> -> vector<16x32xf32>
    %39 = arith.truncf %38 : vector<16x32xf32> to vector<16x32xbf16>
    %c4 = arith.constant 4 : index
    %c0_31 = arith.constant 0 : index
    %c0_32 = arith.constant 0 : index
    %40 = vector.load %arg5[%c4, %c0_31, %c0_32] : memref<16x32x64xbf16, #tpu.memory_space<vmem>>, vector<1x32x64xbf16>
    %41 = vector.shape_cast %40 : vector<1x32x64xbf16> to vector<32x64xbf16>
    %cst_33 = arith.constant dense<0.000000e+00> : vector<16x64xf32>
    %42 = tpu.matmul %39, %41, %cst_33 {dimension_numbers = #tpu.dot_dimension_numbers<[1], [0], [0], [1], [0, 0, 1, 1], [], []>} : vector<16x32xbf16>, vector<32x64xbf16>, vector<16x64xf32> -> vector<16x64xf32>
    %43 = arith.addf %36, %42 : vector<16x64xf32>
    %c80 = arith.constant 80 : index
    %c0_34 = arith.constant 0 : index
    %44 = vector.load %arg4[%c80, %c0_34] : memref<256x100xbf16, #tpu.memory_space<vmem>>, vector<16x100xbf16>
    %cst_35 = arith.constant dense<0.000000e+00> : vector<16x32xf32>
    %45 = tpu.matmul %44, %9, %cst_35 {dimension_numbers = #tpu.dot_dimension_numbers<[1], [0], [0], [1], [0, 0, 1, 1], [], []>} : vector<16x100xbf16>, vector<100x32xbf16>, vector<16x32xf32> -> vector<16x32xf32>
    %46 = arith.truncf %45 : vector<16x32xf32> to vector<16x32xbf16>
    %c5 = arith.constant 5 : index
    %c0_36 = arith.constant 0 : index
    %c0_37 = arith.constant 0 : index
    %47 = vector.load %arg5[%c5, %c0_36, %c0_37] : memref<16x32x64xbf16, #tpu.memory_space<vmem>>, vector<1x32x64xbf16>
    %48 = vector.shape_cast %47 : vector<1x32x64xbf16> to vector<32x64xbf16>
    %cst_38 = arith.constant dense<0.000000e+00> : vector<16x64xf32>
    %49 = tpu.matmul %46, %48, %cst_38 {dimension_numbers = #tpu.dot_dimension_numbers<[1], [0], [0], [1], [0, 0, 1, 1], [], []>} : vector<16x32xbf16>, vector<32x64xbf16>, vector<16x64xf32> -> vector<16x64xf32>
    %50 = arith.addf %43, %49 : vector<16x64xf32>
    %c96 = arith.constant 96 : index
    %c0_39 = arith.constant 0 : index
    %51 = vector.load %arg4[%c96, %c0_39] : memref<256x100xbf16, #tpu.memory_space<vmem>>, vector<16x100xbf16>
    %cst_40 = arith.constant dense<0.000000e+00> : vector<16x32xf32>
    %52 = tpu.matmul %51, %9, %cst_40 {dimension_numbers = #tpu.dot_dimension_numbers<[1], [0], [0], [1], [0, 0, 1, 1], [], []>} : vector<16x100xbf16>, vector<100x32xbf16>, vector<16x32xf32> -> vector<16x32xf32>
    %53 = arith.truncf %52 : vector<16x32xf32> to vector<16x32xbf16>
    %c6 = arith.constant 6 : index
    %c0_41 = arith.constant 0 : index
    %c0_42 = arith.constant 0 : index
    %54 = vector.load %arg5[%c6, %c0_41, %c0_42] : memref<16x32x64xbf16, #tpu.memory_space<vmem>>, vector<1x32x64xbf16>
    %55 = vector.shape_cast %54 : vector<1x32x64xbf16> to vector<32x64xbf16>
    %cst_43 = arith.constant dense<0.000000e+00> : vector<16x64xf32>
    %56 = tpu.matmul %53, %55, %cst_43 {dimension_numbers = #tpu.dot_dimension_numbers<[1], [0], [0], [1], [0, 0, 1, 1], [], []>} : vector<16x32xbf16>, vector<32x64xbf16>, vector<16x64xf32> -> vector<16x64xf32>
    %57 = arith.addf %50, %56 : vector<16x64xf32>
    %c112 = arith.constant 112 : index
    %c0_44 = arith.constant 0 : index
    %58 = vector.load %arg4[%c112, %c0_44] : memref<256x100xbf16, #tpu.memory_space<vmem>>, vector<16x100xbf16>
    %cst_45 = arith.constant dense<0.000000e+00> : vector<16x32xf32>
    %59 = tpu.matmul %58, %9, %cst_45 {dimension_numbers = #tpu.dot_dimension_numbers<[1], [0], [0], [1], [0, 0, 1, 1], [], []>} : vector<16x100xbf16>, vector<100x32xbf16>, vector<16x32xf32> -> vector<16x32xf32>
    %60 = arith.truncf %59 : vector<16x32xf32> to vector<16x32xbf16>
    %c7 = arith.constant 7 : index
    %c0_46 = arith.constant 0 : index
    %c0_47 = arith.constant 0 : index
    %61 = vector.load %arg5[%c7, %c0_46, %c0_47] : memref<16x32x64xbf16, #tpu.memory_space<vmem>>, vector<1x32x64xbf16>
    %62 = vector.shape_cast %61 : vector<1x32x64xbf16> to vector<32x64xbf16>
    %cst_48 = arith.constant dense<0.000000e+00> : vector<16x64xf32>
    %63 = tpu.matmul %60, %62, %cst_48 {dimension_numbers = #tpu.dot_dimension_numbers<[1], [0], [0], [1], [0, 0, 1, 1], [], []>} : vector<16x32xbf16>, vector<32x64xbf16>, vector<16x64xf32> -> vector<16x64xf32>
    %64 = arith.addf %57, %63 : vector<16x64xf32>
    %c128 = arith.constant 128 : index
    %c0_49 = arith.constant 0 : index
    %65 = vector.load %arg4[%c128, %c0_49] : memref<256x100xbf16, #tpu.memory_space<vmem>>, vector<16x100xbf16>
    %cst_50 = arith.constant dense<0.000000e+00> : vector<16x32xf32>
    %66 = tpu.matmul %65, %9, %cst_50 {dimension_numbers = #tpu.dot_dimension_numbers<[1], [0], [0], [1], [0, 0, 1, 1], [], []>} : vector<16x100xbf16>, vector<100x32xbf16>, vector<16x32xf32> -> vector<16x32xf32>
    %67 = arith.truncf %66 : vector<16x32xf32> to vector<16x32xbf16>
    %c8 = arith.constant 8 : index
    %c0_51 = arith.constant 0 : index
    %c0_52 = arith.constant 0 : index
    %68 = vector.load %arg5[%c8, %c0_51, %c0_52] : memref<16x32x64xbf16, #tpu.memory_space<vmem>>, vector<1x32x64xbf16>
    %69 = vector.shape_cast %68 : vector<1x32x64xbf16> to vector<32x64xbf16>
    %cst_53 = arith.constant dense<0.000000e+00> : vector<16x64xf32>
    %70 = tpu.matmul %67, %69, %cst_53 {dimension_numbers = #tpu.dot_dimension_numbers<[1], [0], [0], [1], [0, 0, 1, 1], [], []>} : vector<16x32xbf16>, vector<32x64xbf16>, vector<16x64xf32> -> vector<16x64xf32>
    %71 = arith.addf %64, %70 : vector<16x64xf32>
    %c144 = arith.constant 144 : index
    %c0_54 = arith.constant 0 : index
    %72 = vector.load %arg4[%c144, %c0_54] : memref<256x100xbf16, #tpu.memory_space<vmem>>, vector<16x100xbf16>
    %cst_55 = arith.constant dense<0.000000e+00> : vector<16x32xf32>
    %73 = tpu.matmul %72, %9, %cst_55 {dimension_numbers = #tpu.dot_dimension_numbers<[1], [0], [0], [1], [0, 0, 1, 1], [], []>} : vector<16x100xbf16>, vector<100x32xbf16>, vector<16x32xf32> -> vector<16x32xf32>
    %74 = arith.truncf %73 : vector<16x32xf32> to vector<16x32xbf16>
    %c9 = arith.constant 9 : index
    %c0_56 = arith.constant 0 : index
    %c0_57 = arith.constant 0 : index
    %75 = vector.load %arg5[%c9, %c0_56, %c0_57] : memref<16x32x64xbf16, #tpu.memory_space<vmem>>, vector<1x32x64xbf16>
    %76 = vector.shape_cast %75 : vector<1x32x64xbf16> to vector<32x64xbf16>
    %cst_58 = arith.constant dense<0.000000e+00> : vector<16x64xf32>
    %77 = tpu.matmul %74, %76, %cst_58 {dimension_numbers = #tpu.dot_dimension_numbers<[1], [0], [0], [1], [0, 0, 1, 1], [], []>} : vector<16x32xbf16>, vector<32x64xbf16>, vector<16x64xf32> -> vector<16x64xf32>
    %78 = arith.addf %71, %77 : vector<16x64xf32>
    %c160 = arith.constant 160 : index
    %c0_59 = arith.constant 0 : index
    %79 = vector.load %arg4[%c160, %c0_59] : memref<256x100xbf16, #tpu.memory_space<vmem>>, vector<16x100xbf16>
    %cst_60 = arith.constant dense<0.000000e+00> : vector<16x32xf32>
    %80 = tpu.matmul %79, %9, %cst_60 {dimension_numbers = #tpu.dot_dimension_numbers<[1], [0], [0], [1], [0, 0, 1, 1], [], []>} : vector<16x100xbf16>, vector<100x32xbf16>, vector<16x32xf32> -> vector<16x32xf32>
    %81 = arith.truncf %80 : vector<16x32xf32> to vector<16x32xbf16>
    %c10 = arith.constant 10 : index
    %c0_61 = arith.constant 0 : index
    %c0_62 = arith.constant 0 : index
    %82 = vector.load %arg5[%c10, %c0_61, %c0_62] : memref<16x32x64xbf16, #tpu.memory_space<vmem>>, vector<1x32x64xbf16>
    %83 = vector.shape_cast %82 : vector<1x32x64xbf16> to vector<32x64xbf16>
    %cst_63 = arith.constant dense<0.000000e+00> : vector<16x64xf32>
    %84 = tpu.matmul %81, %83, %cst_63 {dimension_numbers = #tpu.dot_dimension_numbers<[1], [0], [0], [1], [0, 0, 1, 1], [], []>} : vector<16x32xbf16>, vector<32x64xbf16>, vector<16x64xf32> -> vector<16x64xf32>
    %85 = arith.addf %78, %84 : vector<16x64xf32>
    %c176 = arith.constant 176 : index
    %c0_64 = arith.constant 0 : index
    %86 = vector.load %arg4[%c176, %c0_64] : memref<256x100xbf16, #tpu.memory_space<vmem>>, vector<16x100xbf16>
    %cst_65 = arith.constant dense<0.000000e+00> : vector<16x32xf32>
    %87 = tpu.matmul %86, %9, %cst_65 {dimension_numbers = #tpu.dot_dimension_numbers<[1], [0], [0], [1], [0, 0, 1, 1], [], []>} : vector<16x100xbf16>, vector<100x32xbf16>, vector<16x32xf32> -> vector<16x32xf32>
    %88 = arith.truncf %87 : vector<16x32xf32> to vector<16x32xbf16>
    %c11 = arith.constant 11 : index
    %c0_66 = arith.constant 0 : index
    %c0_67 = arith.constant 0 : index
    %89 = vector.load %arg5[%c11, %c0_66, %c0_67] : memref<16x32x64xbf16, #tpu.memory_space<vmem>>, vector<1x32x64xbf16>
    %90 = vector.shape_cast %89 : vector<1x32x64xbf16> to vector<32x64xbf16>
    %cst_68 = arith.constant dense<0.000000e+00> : vector<16x64xf32>
    %91 = tpu.matmul %88, %90, %cst_68 {dimension_numbers = #tpu.dot_dimension_numbers<[1], [0], [0], [1], [0, 0, 1, 1], [], []>} : vector<16x32xbf16>, vector<32x64xbf16>, vector<16x64xf32> -> vector<16x64xf32>
    %92 = arith.addf %85, %91 : vector<16x64xf32>
    %c192 = arith.constant 192 : index
    %c0_69 = arith.constant 0 : index
    %93 = vector.load %arg4[%c192, %c0_69] : memref<256x100xbf16, #tpu.memory_space<vmem>>, vector<16x100xbf16>
    %cst_70 = arith.constant dense<0.000000e+00> : vector<16x32xf32>
    %94 = tpu.matmul %93, %9, %cst_70 {dimension_numbers = #tpu.dot_dimension_numbers<[1], [0], [0], [1], [0, 0, 1, 1], [], []>} : vector<16x100xbf16>, vector<100x32xbf16>, vector<16x32xf32> -> vector<16x32xf32>
    %95 = arith.truncf %94 : vector<16x32xf32> to vector<16x32xbf16>
    %c12 = arith.constant 12 : index
    %c0_71 = arith.constant 0 : index
    %c0_72 = arith.constant 0 : index
    %96 = vector.load %arg5[%c12, %c0_71, %c0_72] : memref<16x32x64xbf16, #tpu.memory_space<vmem>>, vector<1x32x64xbf16>
    %97 = vector.shape_cast %96 : vector<1x32x64xbf16> to vector<32x64xbf16>
    %cst_73 = arith.constant dense<0.000000e+00> : vector<16x64xf32>
    %98 = tpu.matmul %95, %97, %cst_73 {dimension_numbers = #tpu.dot_dimension_numbers<[1], [0], [0], [1], [0, 0, 1, 1], [], []>} : vector<16x32xbf16>, vector<32x64xbf16>, vector<16x64xf32> -> vector<16x64xf32>
    %99 = arith.addf %92, %98 : vector<16x64xf32>
    %c208 = arith.constant 208 : index
    %c0_74 = arith.constant 0 : index
    %100 = vector.load %arg4[%c208, %c0_74] : memref<256x100xbf16, #tpu.memory_space<vmem>>, vector<16x100xbf16>
    %cst_75 = arith.constant dense<0.000000e+00> : vector<16x32xf32>
    %101 = tpu.matmul %100, %9, %cst_75 {dimension_numbers = #tpu.dot_dimension_numbers<[1], [0], [0], [1], [0, 0, 1, 1], [], []>} : vector<16x100xbf16>, vector<100x32xbf16>, vector<16x32xf32> -> vector<16x32xf32>
    %102 = arith.truncf %101 : vector<16x32xf32> to vector<16x32xbf16>
    %c13 = arith.constant 13 : index
    %c0_76 = arith.constant 0 : index
    %c0_77 = arith.constant 0 : index
    %103 = vector.load %arg5[%c13, %c0_76, %c0_77] : memref<16x32x64xbf16, #tpu.memory_space<vmem>>, vector<1x32x64xbf16>
    %104 = vector.shape_cast %103 : vector<1x32x64xbf16> to vector<32x64xbf16>
    %cst_78 = arith.constant dense<0.000000e+00> : vector<16x64xf32>
    %105 = tpu.matmul %102, %104, %cst_78 {dimension_numbers = #tpu.dot_dimension_numbers<[1], [0], [0], [1], [0, 0, 1, 1], [], []>} : vector<16x32xbf16>, vector<32x64xbf16>, vector<16x64xf32> -> vector<16x64xf32>
    %106 = arith.addf %99, %105 : vector<16x64xf32>
    %c224 = arith.constant 224 : index
    %c0_79 = arith.constant 0 : index
    %107 = vector.load %arg4[%c224, %c0_79] : memref<256x100xbf16, #tpu.memory_space<vmem>>, vector<16x100xbf16>
    %cst_80 = arith.constant dense<0.000000e+00> : vector<16x32xf32>
    %108 = tpu.matmul %107, %9, %cst_80 {dimension_numbers = #tpu.dot_dimension_numbers<[1], [0], [0], [1], [0, 0, 1, 1], [], []>} : vector<16x100xbf16>, vector<100x32xbf16>, vector<16x32xf32> -> vector<16x32xf32>
    %109 = arith.truncf %108 : vector<16x32xf32> to vector<16x32xbf16>
    %c14 = arith.constant 14 : index
    %c0_81 = arith.constant 0 : index
    %c0_82 = arith.constant 0 : index
    %110 = vector.load %arg5[%c14, %c0_81, %c0_82] : memref<16x32x64xbf16, #tpu.memory_space<vmem>>, vector<1x32x64xbf16>
    %111 = vector.shape_cast %110 : vector<1x32x64xbf16> to vector<32x64xbf16>
    %cst_83 = arith.constant dense<0.000000e+00> : vector<16x64xf32>
    %112 = tpu.matmul %109, %111, %cst_83 {dimension_numbers = #tpu.dot_dimension_numbers<[1], [0], [0], [1], [0, 0, 1, 1], [], []>} : vector<16x32xbf16>, vector<32x64xbf16>, vector<16x64xf32> -> vector<16x64xf32>
    %113 = arith.addf %106, %112 : vector<16x64xf32>
    %c240 = arith.constant 240 : index
    %c0_84 = arith.constant 0 : index
    %114 = vector.load %arg4[%c240, %c0_84] : memref<256x100xbf16, #tpu.memory_space<vmem>>, vector<16x100xbf16>
    %cst_85 = arith.constant dense<0.000000e+00> : vector<16x32xf32>
    %115 = tpu.matmul %114, %9, %cst_85 {dimension_numbers = #tpu.dot_dimension_numbers<[1], [0], [0], [1], [0, 0, 1, 1], [], []>} : vector<16x100xbf16>, vector<100x32xbf16>, vector<16x32xf32> -> vector<16x32xf32>
    %116 = arith.truncf %115 : vector<16x32xf32> to vector<16x32xbf16>
    %c15 = arith.constant 15 : index
    %c0_86 = arith.constant 0 : index
    %c0_87 = arith.constant 0 : index
    %117 = vector.load %arg5[%c15, %c0_86, %c0_87] : memref<16x32x64xbf16, #tpu.memory_space<vmem>>, vector<1x32x64xbf16>
    %118 = vector.shape_cast %117 : vector<1x32x64xbf16> to vector<32x64xbf16>
    %cst_88 = arith.constant dense<0.000000e+00> : vector<16x64xf32>
    %119 = tpu.matmul %116, %118, %cst_88 {dimension_numbers = #tpu.dot_dimension_numbers<[1], [0], [0], [1], [0, 0, 1, 1], [], []>} : vector<16x32xbf16>, vector<32x64xbf16>, vector<16x64xf32> -> vector<16x64xf32>
    %120 = arith.addf %113, %119 : vector<16x64xf32>
    %c0_89 = arith.constant 0 : index
    %c0_90 = arith.constant 0 : index
    %121 = vector.load %arg6[%c0_89, %c0_90] : memref<1x64xf32, #tpu.memory_space<vmem>>, vector<1x64xf32>
    %122 = vector.broadcast %121 : vector<1x64xf32> to vector<16x64xf32>
    %123 = arith.addf %120, %122 : vector<16x64xf32>
    %cst_91 = arith.constant 0.000000e+00 : f32
    %124 = vector.broadcast %cst_91 : f32 to vector<16x64xf32>
    %125 = arith.maximumf %123, %124 : vector<16x64xf32>
    %126 = arith.truncf %125 : vector<16x64xf32> to vector<16x64xbf16>
    %c0_92 = arith.constant 0 : index
    %c0_93 = arith.constant 0 : index
    %127 = vector.load %arg7[%c0_92, %c0_93] : memref<72x16xbf16, #tpu.memory_space<vmem>>, vector<8x16xbf16>
    %cst_94 = arith.constant dense<0.000000e+00> : vector<8x64xf32>
    %128 = tpu.matmul %127, %126, %cst_94 {dimension_numbers = #tpu.dot_dimension_numbers<[1], [0], [0], [1], [0, 0, 1, 1], [], []>} : vector<8x16xbf16>, vector<16x64xbf16>, vector<8x64xf32> -> vector<8x64xf32>
    %129 = arith.truncf %128 : vector<8x64xf32> to vector<8x64xbf16>
    %c0_95 = arith.constant 0 : index
    %c0_96 = arith.constant 0 : index
    %c0_97 = arith.constant 0 : index
    %130 = vector.load %arg8[%c0_95, %c0_96, %c0_97] : memref<9x64x64xbf16, #tpu.memory_space<vmem>>, vector<1x64x64xbf16>
    %131 = vector.shape_cast %130 : vector<1x64x64xbf16> to vector<64x64xbf16>
    %cst_98 = arith.constant dense<0.000000e+00> : vector<8x64xf32>
    %132 = tpu.matmul %129, %131, %cst_98 {dimension_numbers = #tpu.dot_dimension_numbers<[1], [0], [0], [1], [0, 0, 1, 1], [], []>} : vector<8x64xbf16>, vector<64x64xbf16>, vector<8x64xf32> -> vector<8x64xf32>
    %c8_99 = arith.constant 8 : index
    %c0_100 = arith.constant 0 : index
    %133 = vector.load %arg7[%c8_99, %c0_100] : memref<72x16xbf16, #tpu.memory_space<vmem>>, vector<8x16xbf16>
    %cst_101 = arith.constant dense<0.000000e+00> : vector<8x64xf32>
    %134 = tpu.matmul %133, %126, %cst_101 {dimension_numbers = #tpu.dot_dimension_numbers<[1], [0], [0], [1], [0, 0, 1, 1], [], []>} : vector<8x16xbf16>, vector<16x64xbf16>, vector<8x64xf32> -> vector<8x64xf32>
    %135 = arith.truncf %134 : vector<8x64xf32> to vector<8x64xbf16>
    %c1_102 = arith.constant 1 : index
    %c0_103 = arith.constant 0 : index
    %c0_104 = arith.constant 0 : index
    %136 = vector.load %arg8[%c1_102, %c0_103, %c0_104] : memref<9x64x64xbf16, #tpu.memory_space<vmem>>, vector<1x64x64xbf16>
    %137 = vector.shape_cast %136 : vector<1x64x64xbf16> to vector<64x64xbf16>
    %cst_105 = arith.constant dense<0.000000e+00> : vector<8x64xf32>
    %138 = tpu.matmul %135, %137, %cst_105 {dimension_numbers = #tpu.dot_dimension_numbers<[1], [0], [0], [1], [0, 0, 1, 1], [], []>} : vector<8x64xbf16>, vector<64x64xbf16>, vector<8x64xf32> -> vector<8x64xf32>
    %139 = arith.addf %132, %138 : vector<8x64xf32>
    %c16_106 = arith.constant 16 : index
    %c0_107 = arith.constant 0 : index
    %140 = vector.load %arg7[%c16_106, %c0_107] : memref<72x16xbf16, #tpu.memory_space<vmem>>, vector<8x16xbf16>
    %cst_108 = arith.constant dense<0.000000e+00> : vector<8x64xf32>
    %141 = tpu.matmul %140, %126, %cst_108 {dimension_numbers = #tpu.dot_dimension_numbers<[1], [0], [0], [1], [0, 0, 1, 1], [], []>} : vector<8x16xbf16>, vector<16x64xbf16>, vector<8x64xf32> -> vector<8x64xf32>
    %142 = arith.truncf %141 : vector<8x64xf32> to vector<8x64xbf16>
    %c2_109 = arith.constant 2 : index
    %c0_110 = arith.constant 0 : index
    %c0_111 = arith.constant 0 : index
    %143 = vector.load %arg8[%c2_109, %c0_110, %c0_111] : memref<9x64x64xbf16, #tpu.memory_space<vmem>>, vector<1x64x64xbf16>
    %144 = vector.shape_cast %143 : vector<1x64x64xbf16> to vector<64x64xbf16>
    %cst_112 = arith.constant dense<0.000000e+00> : vector<8x64xf32>
    %145 = tpu.matmul %142, %144, %cst_112 {dimension_numbers = #tpu.dot_dimension_numbers<[1], [0], [0], [1], [0, 0, 1, 1], [], []>} : vector<8x64xbf16>, vector<64x64xbf16>, vector<8x64xf32> -> vector<8x64xf32>
    %146 = arith.addf %139, %145 : vector<8x64xf32>
    %c24 = arith.constant 24 : index
    %c0_113 = arith.constant 0 : index
    %147 = vector.load %arg7[%c24, %c0_113] : memref<72x16xbf16, #tpu.memory_space<vmem>>, vector<8x16xbf16>
    %cst_114 = arith.constant dense<0.000000e+00> : vector<8x64xf32>
    %148 = tpu.matmul %147, %126, %cst_114 {dimension_numbers = #tpu.dot_dimension_numbers<[1], [0], [0], [1], [0, 0, 1, 1], [], []>} : vector<8x16xbf16>, vector<16x64xbf16>, vector<8x64xf32> -> vector<8x64xf32>
    %149 = arith.truncf %148 : vector<8x64xf32> to vector<8x64xbf16>
    %c3_115 = arith.constant 3 : index
    %c0_116 = arith.constant 0 : index
    %c0_117 = arith.constant 0 : index
    %150 = vector.load %arg8[%c3_115, %c0_116, %c0_117] : memref<9x64x64xbf16, #tpu.memory_space<vmem>>, vector<1x64x64xbf16>
    %151 = vector.shape_cast %150 : vector<1x64x64xbf16> to vector<64x64xbf16>
    %cst_118 = arith.constant dense<0.000000e+00> : vector<8x64xf32>
    %152 = tpu.matmul %149, %151, %cst_118 {dimension_numbers = #tpu.dot_dimension_numbers<[1], [0], [0], [1], [0, 0, 1, 1], [], []>} : vector<8x64xbf16>, vector<64x64xbf16>, vector<8x64xf32> -> vector<8x64xf32>
    %153 = arith.addf %146, %152 : vector<8x64xf32>
    %c32_119 = arith.constant 32 : index
    %c0_120 = arith.constant 0 : index
    %154 = vector.load %arg7[%c32_119, %c0_120] : memref<72x16xbf16, #tpu.memory_space<vmem>>, vector<8x16xbf16>
    %cst_121 = arith.constant dense<0.000000e+00> : vector<8x64xf32>
    %155 = tpu.matmul %154, %126, %cst_121 {dimension_numbers = #tpu.dot_dimension_numbers<[1], [0], [0], [1], [0, 0, 1, 1], [], []>} : vector<8x16xbf16>, vector<16x64xbf16>, vector<8x64xf32> -> vector<8x64xf32>
    %156 = arith.truncf %155 : vector<8x64xf32> to vector<8x64xbf16>
    %c4_122 = arith.constant 4 : index
    %c0_123 = arith.constant 0 : index
    %c0_124 = arith.constant 0 : index
    %157 = vector.load %arg8[%c4_122, %c0_123, %c0_124] : memref<9x64x64xbf16, #tpu.memory_space<vmem>>, vector<1x64x64xbf16>
    %158 = vector.shape_cast %157 : vector<1x64x64xbf16> to vector<64x64xbf16>
    %cst_125 = arith.constant dense<0.000000e+00> : vector<8x64xf32>
    %159 = tpu.matmul %156, %158, %cst_125 {dimension_numbers = #tpu.dot_dimension_numbers<[1], [0], [0], [1], [0, 0, 1, 1], [], []>} : vector<8x64xbf16>, vector<64x64xbf16>, vector<8x64xf32> -> vector<8x64xf32>
    %160 = arith.addf %153, %159 : vector<8x64xf32>
    %c40 = arith.constant 40 : index
    %c0_126 = arith.constant 0 : index
    %161 = vector.load %arg7[%c40, %c0_126] : memref<72x16xbf16, #tpu.memory_space<vmem>>, vector<8x16xbf16>
    %cst_127 = arith.constant dense<0.000000e+00> : vector<8x64xf32>
    %162 = tpu.matmul %161, %126, %cst_127 {dimension_numbers = #tpu.dot_dimension_numbers<[1], [0], [0], [1], [0, 0, 1, 1], [], []>} : vector<8x16xbf16>, vector<16x64xbf16>, vector<8x64xf32> -> vector<8x64xf32>
    %163 = arith.truncf %162 : vector<8x64xf32> to vector<8x64xbf16>
    %c5_128 = arith.constant 5 : index
    %c0_129 = arith.constant 0 : index
    %c0_130 = arith.constant 0 : index
    %164 = vector.load %arg8[%c5_128, %c0_129, %c0_130] : memref<9x64x64xbf16, #tpu.memory_space<vmem>>, vector<1x64x64xbf16>
    %165 = vector.shape_cast %164 : vector<1x64x64xbf16> to vector<64x64xbf16>
    %cst_131 = arith.constant dense<0.000000e+00> : vector<8x64xf32>
    %166 = tpu.matmul %163, %165, %cst_131 {dimension_numbers = #tpu.dot_dimension_numbers<[1], [0], [0], [1], [0, 0, 1, 1], [], []>} : vector<8x64xbf16>, vector<64x64xbf16>, vector<8x64xf32> -> vector<8x64xf32>
    %167 = arith.addf %160, %166 : vector<8x64xf32>
    %c48_132 = arith.constant 48 : index
    %c0_133 = arith.constant 0 : index
    %168 = vector.load %arg7[%c48_132, %c0_133] : memref<72x16xbf16, #tpu.memory_space<vmem>>, vector<8x16xbf16>
    %cst_134 = arith.constant dense<0.000000e+00> : vector<8x64xf32>
    %169 = tpu.matmul %168, %126, %cst_134 {dimension_numbers = #tpu.dot_dimension_numbers<[1], [0], [0], [1], [0, 0, 1, 1], [], []>} : vector<8x16xbf16>, vector<16x64xbf16>, vector<8x64xf32> -> vector<8x64xf32>
    %170 = arith.truncf %169 : vector<8x64xf32> to vector<8x64xbf16>
    %c6_135 = arith.constant 6 : index
    %c0_136 = arith.constant 0 : index
    %c0_137 = arith.constant 0 : index
    %171 = vector.load %arg8[%c6_135, %c0_136, %c0_137] : memref<9x64x64xbf16, #tpu.memory_space<vmem>>, vector<1x64x64xbf16>
    %172 = vector.shape_cast %171 : vector<1x64x64xbf16> to vector<64x64xbf16>
    %cst_138 = arith.constant dense<0.000000e+00> : vector<8x64xf32>
    %173 = tpu.matmul %170, %172, %cst_138 {dimension_numbers = #tpu.dot_dimension_numbers<[1], [0], [0], [1], [0, 0, 1, 1], [], []>} : vector<8x64xbf16>, vector<64x64xbf16>, vector<8x64xf32> -> vector<8x64xf32>
    %174 = arith.addf %167, %173 : vector<8x64xf32>
    %c56 = arith.constant 56 : index
    %c0_139 = arith.constant 0 : index
    %175 = vector.load %arg7[%c56, %c0_139] : memref<72x16xbf16, #tpu.memory_space<vmem>>, vector<8x16xbf16>
    %cst_140 = arith.constant dense<0.000000e+00> : vector<8x64xf32>
    %176 = tpu.matmul %175, %126, %cst_140 {dimension_numbers = #tpu.dot_dimension_numbers<[1], [0], [0], [1], [0, 0, 1, 1], [], []>} : vector<8x16xbf16>, vector<16x64xbf16>, vector<8x64xf32> -> vector<8x64xf32>
    %177 = arith.truncf %176 : vector<8x64xf32> to vector<8x64xbf16>
    %c7_141 = arith.constant 7 : index
    %c0_142 = arith.constant 0 : index
    %c0_143 = arith.constant 0 : index
    %178 = vector.load %arg8[%c7_141, %c0_142, %c0_143] : memref<9x64x64xbf16, #tpu.memory_space<vmem>>, vector<1x64x64xbf16>
    %179 = vector.shape_cast %178 : vector<1x64x64xbf16> to vector<64x64xbf16>
    %cst_144 = arith.constant dense<0.000000e+00> : vector<8x64xf32>
    %180 = tpu.matmul %177, %179, %cst_144 {dimension_numbers = #tpu.dot_dimension_numbers<[1], [0], [0], [1], [0, 0, 1, 1], [], []>} : vector<8x64xbf16>, vector<64x64xbf16>, vector<8x64xf32> -> vector<8x64xf32>
    %181 = arith.addf %174, %180 : vector<8x64xf32>
    %c64_145 = arith.constant 64 : index
    %c0_146 = arith.constant 0 : index
    %182 = vector.load %arg7[%c64_145, %c0_146] : memref<72x16xbf16, #tpu.memory_space<vmem>>, vector<8x16xbf16>
    %cst_147 = arith.constant dense<0.000000e+00> : vector<8x64xf32>
    %183 = tpu.matmul %182, %126, %cst_147 {dimension_numbers = #tpu.dot_dimension_numbers<[1], [0], [0], [1], [0, 0, 1, 1], [], []>} : vector<8x16xbf16>, vector<16x64xbf16>, vector<8x64xf32> -> vector<8x64xf32>
    %184 = arith.truncf %183 : vector<8x64xf32> to vector<8x64xbf16>
    %c8_148 = arith.constant 8 : index
    %c0_149 = arith.constant 0 : index
    %c0_150 = arith.constant 0 : index
    %185 = vector.load %arg8[%c8_148, %c0_149, %c0_150] : memref<9x64x64xbf16, #tpu.memory_space<vmem>>, vector<1x64x64xbf16>
    %186 = vector.shape_cast %185 : vector<1x64x64xbf16> to vector<64x64xbf16>
    %cst_151 = arith.constant dense<0.000000e+00> : vector<8x64xf32>
    %187 = tpu.matmul %184, %186, %cst_151 {dimension_numbers = #tpu.dot_dimension_numbers<[1], [0], [0], [1], [0, 0, 1, 1], [], []>} : vector<8x64xbf16>, vector<64x64xbf16>, vector<8x64xf32> -> vector<8x64xf32>
    %188 = arith.addf %181, %187 : vector<8x64xf32>
    %c0_152 = arith.constant 0 : index
    %c0_153 = arith.constant 0 : index
    %189 = vector.load %arg9[%c0_152, %c0_153] : memref<1x64xf32, #tpu.memory_space<vmem>>, vector<1x64xf32>
    %190 = vector.broadcast %189 : vector<1x64xf32> to vector<8x64xf32>
    %191 = arith.addf %188, %190 : vector<8x64xf32>
    %cst_154 = arith.constant 0.000000e+00 : f32
    %192 = vector.broadcast %cst_154 : f32 to vector<8x64xf32>
    %193 = arith.maximumf %191, %192 : vector<8x64xf32>
    %194 = vector.extract_strided_slice %193 {offsets = [0, 0], sizes = [4, 64], strides = [1, 1]} : vector<8x64xf32> to vector<4x64xf32>
    %c0_155 = arith.constant 0 : index
    %c0_156 = arith.constant 0 : index
    %c0_157 = arith.constant 0 : index
    %195 = vector.load %arg10[%c0_155, %c0_156, %c0_157] : memref<1x4x64xf32, #tpu.memory_space<vmem>>, vector<1x4x64xf32>
    %196 = vector.shape_cast %195 : vector<1x4x64xf32> to vector<4x64xf32>
    %197 = vector.shape_cast %194 : vector<4x64xf32> to vector<1x4x64xf32>
    tpu.vector_store %arg10[%c0_155, %c0_156, %c0_157], %197 {strides = array<i32>} : memref<1x4x64xf32, #tpu.memory_space<vmem>>, vector<1x4x64xf32>,
    return
  }
  func.func @transform_0(%arg0: i32) -> (i32, i32, i32) {
    %c0_i32 = arith.constant 0 : i32
    %c0_i32_0 = arith.constant 0 : i32
    %c0_i32_1 = arith.constant 0 : i32
    return %arg0, %c0_i32, %c0_i32_0 : i32, i32, i32
  }
  func.func @transform_1(%arg0: i32) -> (i32, i32) {
    %c0_i32 = arith.constant 0 : i32
    %c0_i32_0 = arith.constant 0 : i32
    %c0_i32_1 = arith.constant 0 : i32
    return %c0_i32, %c0_i32_0 : i32, i32
  }
  func.func @transform_2(%arg0: i32) -> (i32, i32) {
    %c0_i32 = arith.constant 0 : i32
    %c0_i32_0 = arith.constant 0 : i32
    %c0_i32_1 = arith.constant 0 : i32
    return %c0_i32, %c0_i32_0 : i32, i32
  }
  func.func @transform_3(%arg0: i32) -> (i32, i32) {
    %c0_i32 = arith.constant 0 : i32
    %c0_i32_0 = arith.constant 0 : i32
    %c0_i32_1 = arith.constant 0 : i32
    return %c0_i32, %c0_i32_0 : i32, i32
  }
  func.func @transform_4(%arg0: i32) -> (i32, i32, i32) {
    %c0_i32 = arith.constant 0 : i32
    %c0_i32_0 = arith.constant 0 : i32
    %c0_i32_1 = arith.constant 0 : i32
    %c0_i32_2 = arith.constant 0 : i32
    return %c0_i32, %c0_i32_0, %c0_i32_1 : i32, i32, i32
  }
  func.func @transform_5(%arg0: i32) -> (i32, i32) {
    %c0_i32 = arith.constant 0 : i32
    %c0_i32_0 = arith.constant 0 : i32
    %c0_i32_1 = arith.constant 0 : i32
    return %c0_i32, %c0_i32_0 : i32, i32
  }
  func.func @transform_6(%arg0: i32) -> (i32, i32) {
    %c0_i32 = arith.constant 0 : i32
    %c0_i32_0 = arith.constant 0 : i32
    %c0_i32_1 = arith.constant 0 : i32
    return %c0_i32, %c0_i32_0 : i32, i32
  }
  func.func @transform_7(%arg0: i32) -> (i32, i32, i32) {
    %c0_i32 = arith.constant 0 : i32
    %c0_i32_0 = arith.constant 0 : i32
    %c0_i32_1 = arith.constant 0 : i32
    %c0_i32_2 = arith.constant 0 : i32
    return %c0_i32, %c0_i32_0, %c0_i32_1 : i32, i32, i32
  }
  func.func @transform_8(%arg0: i32) -> (i32, i32) {
    %c0_i32 = arith.constant 0 : i32
    %c0_i32_0 = arith.constant 0 : i32
    %c0_i32_1 = arith.constant 0 : i32
    return %c0_i32, %c0_i32_0 : i32, i32
  }
  func.func @transform_9(%arg0: i32) -> (i32, i32, i32) {
    %c0_i32 = arith.constant 0 : i32
    %c0_i32_0 = arith.constant 0 : i32
    %c0_i32_1 = arith.constant 0 : i32
    return %arg0, %c0_i32, %c0_i32_0 : i32, i32, i32
  }
}

</mosaic_0001>

<bundles_post_ra>
// kernel: _lambda_.1
= control target key start
LH: loop header
LB: loop body
LE: loop exit
PB: predicated region body
PF: predicated region fallthrough
CT: control target
= control target key end

     0   :  { %s5035_s30 = smov 0   ;;  %s5898_s0 = inlined_call_operand.vmem [shape: bf16[2,100,256], index: 0, kind: input, shape index: {}]   ;;  %s5899_s1 = inlined_call_operand.vmem [shape: bf16[256,32], index: 1, kind: input, shape index: {}]   ;;  %s5900_s2 = inlined_call_operand.vmem [shape: f32[1,32], index: 2, kind: input, shape index: {}]   ;;  %s5901_s3 = inlined_call_operand.vmem [shape: bf16[256,100], index: 3, kind: input, shape index: {}]   ;;  %s5902_s4 = inlined_call_operand.vmem [shape: bf16[16,32,64], index: 4, kind: input, shape index: {}]   ;;  %s5903_s5 = inlined_call_operand.vmem [shape: f32[1,64], index: 5, kind: input, shape index: {}]   ;;  %s5904_s6 = inlined_call_operand.vmem [shape: bf16[72,16], index: 6, kind: input, shape index: {}]   ;;  %s5905_s7 = inlined_call_operand.vmem [shape: bf16[9,64,64], index: 7, kind: input, shape index: {}]   ;;  %s5906_s8 = inlined_call_operand.vmem [shape: f32[1,64], index: 8, kind: input, shape index: {}]   ;;  %s5907_s9 = inlined_call_operand.vmem [shape: f32[2,4,64], index: 9, kind: output, shape index: {}]  }
   0x1 LB: > { %s3669_s10 = sadd.s32 4294967295, %s4981_s30   ;;  %p3673_p0 = scmp.ge.s32.totalorder %s4981_s30, 1  ;;  %s4981_s30 = sphi %s5035_s30, %s19_s30  }
   0x2   : > { %p287_p1 = scmp.lt.s32.totalorder %s4981_s30, 3 }
   0x4   : > { %p288_p2 = pnand %p3673_p0, %p287_p1 }
   0x5   : > { %v4855_v0 = vld [vmem:[%s5899_s1 + $0x40] sm:$0xff] (!%p288_p2)   ;;  %v4857_v2 = vld [vmem:[%s5899_s1 + $0x48] sm:$0xff] (!%p288_p2)   ;;  %p322_p3 = scmp.lt.s32.totalorder (!%p288_p2), %s3669_s10, 1  ;;  %v4859_v4 = vld [vmem:[%s5899_s1 + $0x50] sm:$0xff] (!%p288_p2)   ;;  %v4983_v31 = vmov (!%p288_p2), 0.0   ;;  %vm4984_vm0 = vmmov (!%p288_p2), 0  }
   0x6   : > { %291 = sbr.rel (%p288_p2) target bundleno = 5061 (0x13c5), region = 56  ;;  %v4856_v1 = vld [vmem:[%s5899_s1] sm:$0xff] (!%p288_p2)   ;;  %3969 = vmatprep.subr.bf16.mxu0 (!%p288_p2), %v4855_v0  ;;  %v4858_v3 = vld [vmem:[%s5899_s1 + $0x8] sm:$0xff] (!%p288_p2)   ;;  %v4860_v5 = vld [vmem:[%s5899_s1 + $0x10] sm:$0xff] (!%p288_p2)   ;;  %4266 = vmatprep.subr.bf16.mxu1 (!%p288_p2), %v4983_v31  ;;  %vm666_vm1 = vcmask (!%p288_p2), 1041408   ;;  %vm662_vm2 = vcmask (!%p288_p2), 818176  }
   0x7   : > { %3970 = vmatpush3.bf16.msra.mxu0 (!%p288_p2), %v4856_v1  ;;  %v4861_v6 = vld [vmem:[%s5899_s1 + $0x58] sm:$0xff] (!%p288_p2)   ;;  %v4863_v8 = vld [vmem:[%s5899_s1 + $0x60] sm:$0xff] (!%p288_p2)   ;;  %v4865_v10 = vld [vmem:[%s5899_s1 + $0x68] sm:$0xff] (!%p288_p2)   ;;  %4280 = vmatprep.mubr.msk.bf16.mxu1 (!%p288_p2), %vm4984_vm0, %v4983_v31  ;;  %vm785_vm3 = vcmask (!%p288_p2), 261120   ;;  %vm2509_vm4 = vcmask (!%p288_p2), 130048   ;;  %vm2640_vm5 = vcmask (!%p288_p2), 523264  }
   0x8   : > { %3971 = vmatprep.subr.bf16.mxu0 (!%p288_p2), %v4857_v2  ;;  %v4862_v7 = vld [vmem:[%s5899_s1 + $0x18] sm:$0xff] (!%p288_p2)   ;;  %v4864_v9 = vld [vmem:[%s5899_s1 + $0x20] sm:$0xff] (!%p288_p2)   ;;  %v4866_v12 = vld [vmem:[%s5899_s1 + $0x28] sm:$0xff] (!%p288_p2)   ;;  %vm3614_vm6 = vcmask (!%p288_p2), 519168  }
   0x9   : > { %v4867_v13 = vld [vmem:[%s5899_s1 + $0x70] sm:$0xff] (!%p288_p2)   ;;  %v4869_v15 = vld [vmem:[%s5899_s1 + $0x78] sm:$0xff] (!%p288_p2)   ;;  %v5121_v33 = vld [vmem:[%s5900_s2] ss:$0 sm:$0xff] (!%p288_p2) }
   0xa   : > { %v4868_v14 = vld [vmem:[%s5899_s1 + $0x30] sm:$0xff] (!%p288_p2)   ;;  %v4870_v16 = vld [vmem:[%s5899_s1 + $0x38] sm:$0xff] (!%p288_p2)  }
   0xb   : > { %3972 = vmatpush3.bf16.msra.mxu0 (!%p288_p2), %v4858_v3 }
   0xc   : > { %3973 = vmatprep.subr.bf16.mxu0 (!%p288_p2), %v4859_v4 }
   0xd   : > { %s5909_s10 = smov (!%p322_p3, %s3669_s10), 1 }
   0xe   : > { %s4844_s25 = smul.u32 104, %s5909_s10  ;;  %s3675_s11 = sshll.u32 %s5909_s10, 2 }
   0xf   : > { %3974 = vmatpush3.bf16.msra.mxu0 %v4860_v5  ;;  %s330_s14 = scalar_lea.vmem %s5907_s9, %s3675_s11 }
  0x10   : > { %3975 = vmatprep.subr.bf16.mxu0 %v4861_v6  ;;  %s5076_s13 = scalar_lea.vmem %s5898_s0, %s4844_s25 }
  0x11   : > { %v4873_v11 = vld [vmem:[%s5076_s13 + $0x4] ss:$8 sps:$4 sm:$0xff]   ;;  %v4871_v17 = vld [vmem:[%s5076_s13] ss:$8 sps:$4 sm:$0xff]   ;;  %v4874_v18 = vld [vmem:[%s5076_s13 + $0x14] ss:$8 sps:$4 sm:$0xff]  }
  0x12   : > { %579 = vmatprep.mubr.bf16.mxu0 %v4873_v11  ;;  %v4876_v19 = vld [vmem:[%s5076_s13 + $0x10] ss:$8 sps:$4 sm:$0xff]   ;;  %v4877_v20 = vld [vmem:[%s5076_s13 + $0x24] ss:$8 sps:$4 sm:$0xff]   ;;  %v4879_v21 = vld [vmem:[%s5076_s13 + $0x20] ss:$8 sps:$4 sm:$0xff]  }
  0x13   : > { %3976 = vmatpush3.bf16.msra.mxu0 %v4862_v7  ;;  %v4880_v22 = vld [vmem:[%s5076_s13 + $0x34] ss:$8 sps:$4 sm:$0xff]   ;;  %v4882_v23 = vld [vmem:[%s5076_s13 + $0x30] ss:$8 sps:$4 sm:$0xff]   ;;  %v4883_v24 = vld [vmem:[%s5076_s13 + $0x44] ss:$8 sps:$4 sm:$0xff]  }
  0x14   : > { %3977 = vmatprep.subr.bf16.mxu0 %v4863_v8  ;;  %v4885_v25 = vld [vmem:[%s5076_s13 + $0x40] ss:$8 sps:$4 sm:$0xff]   ;;  %v4886_v26 = vld [vmem:[%s5076_s13 + $0x54] ss:$8 sps:$4 sm:$0xff]   ;;  %v4888_v28 = vld [vmem:[%s5076_s13 + $0x50] ss:$8 sps:$4 sm:$0xff]  }
  0x15   : > { %v344_v27 = vld [vmem:[%s5076_s13 + $0x60] sm:$0x33] }
  0x16   : > { %v3690_v29 = vcombine.high %v344_v27, %v344_v27  ;;  %v3689_v30 = vcombine.low %v344_v27, %v344_v27 }
  0x17   : > { %3978 = vmatpush3.bf16.msra.mxu0 %v4864_v9 }
  0x18   : > { %3979 = vmatprep.subr.bf16.mxu0 %v4865_v10 }
  0x1b   : > { %3980 = vmatpush3.bf16.msra.mxu0 %v4866_v12 }
  0x1c   : > { %3981 = vmatprep.subr.bf16.mxu0 %v4867_v13 }
  0x1f   : > { %3982 = vmatpush3.bf16.msra.mxu0 %v4868_v14 }
  0x20   : > { %3983 = vmatprep.subr.bf16.mxu0 %v4869_v15 }
  0x23   : > { %3984 = vmatpush3.bf16.msra.mxu0 %v4870_v16 }
  0x24   : > { %4318 = vmatprep.subr.bf16.mxu0 %v4983_v31 }
  0x26   : > { %580 = vmatmul.mubr.bf16.vlgmr.msra.gmra.mrb[0].mxu0 %v4871_v17 }
  0x27   : > { %587 = vmatprep.mubr.bf16.mxu0 %v4874_v18 }
  0x2e   : > { %588 = vmatmul.mubr.bf16.gmra.mrb[4].mxu0 %v4876_v19 }
  0x2f   : > { %595 = vmatprep.mubr.bf16.mxu0 %v4877_v20 }
  0x36   : > { %596 = vmatmul.mubr.bf16.gmra.mrb[8].mxu0 %v4879_v21 }
  0x37   : > { %603 = vmatprep.mubr.bf16.mxu0 %v4880_v22 }
  0x3e   : > { %604 = vmatmul.mubr.bf16.gmra.mrb[12].mxu0 %v4882_v23 }
  0x3f   : > { %611 = vmatprep.mubr.bf16.mxu0 %v4883_v24 }
  0x46   : > { %612 = vmatmul.mubr.bf16.gmra.mrb[16].mxu0 %v4885_v25 }
  0x47   : > { %619 = vmatprep.mubr.bf16.mxu0 %v4886_v26 }
  0x4e   : > { %620 = vmatmul.mubr.bf16.gmra.mrb[20].mxu0 %v4888_v28 }
  0x4f   : > { %627 = vmatprep.mubr.bf16.mxu0 %v3690_v29 }
  0x56   : > { %628 = vmatmul.mubr.bf16.gmra.mrb[24].mxu0 %v3689_v30 }
  0x57   : > { %4332 = vmatprep.mubr.msk.bf16.mxu0 %vm4984_vm0, %v4983_v31 }
  0xf9   : > { %v3985_v32 = vpop.f32.mrb[0].mxu0 }
  0xfa   : > { %v3986_v34 = vpop.f32.mrb[1].mxu0 }
  0xfb   : > { %v3987_v35 = vadd.f32 %v3986_v34, %v3985_v32  ;;  %v3988_v36 = vpop.f32.mrb[2].mxu0 }
  0xfc   : > { %v3989_v37 = vpop.f32.mrb[3].mxu0 }
  0xfd   : > { %v582_v38 = vadd.f32 %v3987_v35, %v5121_v33  ;;  %v3990_v39 = vadd.f32 %v3989_v37, %v3988_v36 }
  0xff   : > { %v585_v40 = vadd.f32 %v3990_v39, %v5121_v33  ;;  %v635_v41 = vmax.f32 %v582_v38, 0.0 }
 0x101   : > { %v636_v42 = vmax.f32 %v585_v40, 0.0  ;;  %v3991_v43 = vpop.f32.mrb[4].mxu0 }
 0x102   : > { %v3992_v44 = vpop.f32.mrb[5].mxu0 }
 0x103   : > { %v5125_v45 = vpack.c.bf16 %v636_v42, %v635_v41  ;;  %v3993_v46 = vadd.f32 %v3992_v44, %v3991_v43  ;;  %v3994_v47 = vpop.f32.mrb[6].mxu0 }
 0x104   : > { %v3995_v48 = vpop.f32.mrb[7].mxu0 }
 0x105   : > { %v590_v49 = vadd.f32 %v3993_v46, %v5121_v33  ;;  %v3996_v50 = vadd.f32 %v3995_v48, %v3994_v47  ;;  %4267 = vmatpush3.bf16.msra.mxu1 %v5125_v45  ;;  %4319 = vmatpush3.bf16.msra.mxu0 %v5125_v45  ;;  %v4891_v47 = vld [vmem:[%s5901_s3] sm:$0xff]   ;;  %v4893_v48 = vld [vmem:[%s5901_s3 + $0x8] sm:$0xff]  }
 0x106   : > { %4268 = vmatprep.subr.bf16.mxu1 %v4983_v31  ;;  %4320 = vmatprep.subr.bf16.mxu0 %v4983_v31 }
 0x107   : > { %v593_v51 = vadd.f32 %v3996_v50, %v5121_v33  ;;  %v637_v52 = vmax.f32 %v590_v49, 0.0  ;;  %v4894_v49 = vld [vmem:[%s5902_s4 + $0x10] sm:$0xff]   ;;  %v4895_v50 = vld [vmem:[%s5902_s4 + $0x18] sm:$0xff]  }
 0x109   : > { %v638_v53 = vmax.f32 %v593_v51, 0.0  ;;  %v3997_v54 = vpop.f32.mrb[8].mxu0  ;;  %v4901_v51 = vld [vmem:[%s5901_s3 + $0x20] sm:$0xff]  }
 0x10a   : > { %v3998_v55 = vpop.f32.mrb[9].mxu0 }
 0x10b   : > { %v5133_v56 = vpack.c.bf16 %v638_v53, %v637_v52  ;;  %v3999_v57 = vadd.f32 %v3998_v55, %v3997_v54  ;;  %v4000_v58 = vpop.f32.mrb[10].mxu0 }
 0x10c   : > { %v4001_v59 = vpop.f32.mrb[11].mxu0 }
 0x10d   : > { %v598_v60 = vadd.f32 %v3999_v57, %v5121_v33  ;;  %v4002_v61 = vadd.f32 %v4001_v59, %v4000_v58  ;;  %4269 = vmatpush3.bf16.msra.mxu1 %v5133_v56  ;;  %4321 = vmatpush3.bf16.msra.mxu0 %v5133_v56 }
 0x10e   : > { %4270 = vmatprep.subr.bf16.mxu1 %v4983_v31  ;;  %4322 = vmatprep.subr.bf16.mxu0 %v4983_v31 }
 0x10f   : > { %v601_v62 = vadd.f32 %v4002_v61, %v5121_v33  ;;  %v639_v63 = vmax.f32 %v598_v60, 0.0 }
 0x111   : > { %v640_v0 = vmax.f32 %v601_v62, 0.0  ;;  %v4003_v1 = vpop.f32.mrb[12].mxu0 }
 0x112   : > { %v4004_v2 = vpop.f32.mrb[13].mxu0 }
 0x113   : > { %v5141_v3 = vpack.c.bf16 %v640_v0, %v639_v63  ;;  %v4005_v4 = vadd.f32 %v4004_v2, %v4003_v1  ;;  %v4006_v5 = vpop.f32.mrb[14].mxu0  ;;  %v4896_v2 = vld [vmem:[%s5902_s4] sm:$0xff]  }
 0x114   : > { %v4007_v6 = vpop.f32.mrb[15].mxu0 }
 0x115   : > { %v606_v7 = vadd.f32 %v4005_v4, %v5121_v33  ;;  %v4008_v8 = vadd.f32 %v4007_v6, %v4006_v5  ;;  %4271 = vmatpush3.bf16.msra.mxu1 %v5141_v3  ;;  %4323 = vmatpush3.bf16.msra.mxu0 %v5141_v3  ;;  %v4897_v6 = vld [vmem:[%s5902_s4 + $0x8] sm:$0xff]  }
 0x116   : > { %4272 = vmatprep.subr.bf16.mxu1 %v4983_v31  ;;  %4324 = vmatprep.subr.bf16.mxu0 %v4983_v31 }
 0x117   : > { %v609_v9 = vadd.f32 %v4008_v8, %v5121_v33  ;;  %v641_v10 = vmax.f32 %v606_v7, 0.0  ;;  %v4898_v7 = vld [vmem:[%s5902_s4 + $0x20] sm:$0xff]   ;;  %v4899_v8 = vld [vmem:[%s5902_s4 + $0x28] sm:$0xff]  }
 0x119   : > { %v642_v11 = vmax.f32 %v609_v9, 0.0  ;;  %v4009_v12 = vpop.f32.mrb[16].mxu0  ;;  %v4900_v9 = vld [vmem:[%s5901_s3 + $0x18] sm:$0xff]  }
 0x11a   : > { %v4010_v13 = vpop.f32.mrb[17].mxu0 }
 0x11b   : > { %v5149_v14 = vpack.c.bf16 %v642_v11, %v641_v10  ;;  %v4011_v15 = vadd.f32 %v4010_v13, %v4009_v12  ;;  %v4012_v16 = vpop.f32.mrb[18].mxu0  ;;  %v4902_v10 = vld [vmem:[%s5902_s4 + $0x30] sm:$0xff]   ;;  %v4903_v11 = vld [vmem:[%s5902_s4 + $0x38] sm:$0xff]  }
 0x11c   : > { %v4013_v17 = vpop.f32.mrb[19].mxu0 }
 0x11d   : > { %v614_v18 = vadd.f32 %v4011_v15, %v5121_v33  ;;  %v4014_v19 = vadd.f32 %v4013_v17, %v4012_v16  ;;  %4273 = vmatpush3.bf16.msra.mxu1 %v5149_v14  ;;  %4325 = vmatpush3.bf16.msra.mxu0 %v5149_v14 }
 0x11e   : > { %4274 = vmatprep.subr.bf16.mxu1 %v4983_v31  ;;  %4326 = vmatprep.subr.bf16.mxu0 %v4983_v31 }
 0x11f   : > { %v617_v20 = vadd.f32 %v4014_v19, %v5121_v33  ;;  %v643_v21 = vmax.f32 %v614_v18, 0.0 }
 0x121   : > { %v644_v22 = vmax.f32 %v617_v20, 0.0  ;;  %v4015_v23 = vpop.f32.mrb[20].mxu0 }
 0x122   : > { %v4016_v24 = vpop.f32.mrb[21].mxu0 }
 0x123   : > { %v5157_v25 = vpack.c.bf16 %v644_v22, %v643_v21  ;;  %v4017_v26 = vadd.f32 %v4016_v24, %v4015_v23  ;;  %v4018_v27 = vpop.f32.mrb[22].mxu0 }
 0x124   : > { %v4019_v28 = vpop.f32.mrb[23].mxu0 }
 0x125   : > { %v622_v29 = vadd.f32 %v4017_v26, %v5121_v33  ;;  %v4020_v30 = vadd.f32 %v4019_v28, %v4018_v27  ;;  %4275 = vmatpush3.bf16.msra.mxu1 %v5157_v25  ;;  %4327 = vmatpush3.bf16.msra.mxu0 %v5157_v25 }
 0x126   : > { %4276 = vmatprep.subr.bf16.mxu1 %v4983_v31  ;;  %4328 = vmatprep.subr.bf16.mxu0 %v4983_v31 }
 0x127   : > { %v625_v32 = vadd.f32 %v4020_v30, %v5121_v33  ;;  %v645_v34 = vmax.f32 %v622_v29, 0.0 }
 0x129   : > { %v646_v35 = vmax.f32 %v625_v32, 0.0  ;;  %v4021_v36 = vpop.f32.mrb[24].mxu0 }
 0x12a   : > { %v4022_v37 = vpop.f32.mrb[25].mxu0 }
 0x12b   : > { %v5165_v38 = vpack.c.bf16 %v646_v35, %v645_v34  ;;  %v4023_v39 = vadd.f32 %v4022_v37, %v4021_v36  ;;  %v4024_v40 = vpop.f32.mrb[26].mxu0 }
 0x12c   : > { %v4025_v41 = vpop.f32.mrb[27].mxu0 }
 0x12d   : > { %v630_v42 = vadd.f32 %v4023_v39, %v5121_v33  ;;  %4277 = vmatpush3.bf16.msra.mxu1 %v5165_v38  ;;  %4329 = vmatpush3.bf16.msra.mxu0 %v5165_v38  ;;  %v4892_v33 = vld [vmem:[%s5901_s3 + $0x10] sm:$0xff]   ;;  %v4904_v41 = vld [vmem:[%s5902_s4 + $0x40] sm:$0xff]  }
 0x12e   : > { %4278 = vmatprep.subr.bf16.mxu1 %v4983_v31  ;;  %4330 = vmatprep.subr.bf16.mxu0 %v4983_v31 }
 0x12f   : > { %v647_v43 = vmax.f32 %v630_v42, 0.0 }
 0x131   : > { %v654_v44 = vpack.c.bf16 %v647_v43, %v647_v43 }
 0x133   : > { %v5172_v46 = vsel %vm666_vm1, %v654_v44, 0  ;;  %v4905_v44 = vld [vmem:[%s5902_s4 + $0x48] sm:$0xff]  }
 0x134   : > { %4279 = vmatpush3.bf16.msra.mxu1 %v5172_v46  ;;  %4331 = vmatpush3.bf16.msra.mxu0 %v5172_v46 }
 0x135   : > { %4284 = vmatprep.subr.bf16.mxu1 %v4983_v31  ;;  %4370 = vmatprep.subr.bf16.mxu0 %v4983_v31 }
 0x137   : > { %4281 = vmatmul.mubr.msk.bf16.vlgmr.msra.gmra.mrb[0].mxu1 %vm662_vm2, %v4891_v47  ;;  %4333 = vmatmul.mubr.msk.bf16.vlgmr.msra.gmra.mrb[28].mxu0 %vm662_vm2, %v4892_v33  ;;  %v4906_v47 = vld [vmem:[%s5901_s3 + $0x28] sm:$0xff]   ;;  %v4907_v33 = vld [vmem:[%s5902_s4 + $0x50] sm:$0xff]  }
 0x138   : > { %4285 = vmatpush3.bf16.msra.mxu1 %v5125_v45  ;;  %4371 = vmatpush3.bf16.msra.mxu0 %v5125_v45 }
 0x139   : > { %4286 = vmatprep.subr.bf16.mxu1 %v4983_v31  ;;  %4372 = vmatprep.subr.bf16.mxu0 %v4983_v31 }
 0x13a   : > { %4298 = vmatprep.mubr.msk.bf16.mxu1 %vm4984_vm0, %v4983_v31  ;;  %4384 = vmatprep.mubr.msk.bf16.mxu0 %vm4984_vm0, %v4983_v31 }
 0x13c   : > { %4287 = vmatpush3.bf16.msra.mxu1 %v5133_v56  ;;  %4373 = vmatpush3.bf16.msra.mxu0 %v5133_v56 }
 0x13d   : > { %4288 = vmatprep.subr.bf16.mxu1 %v4983_v31  ;;  %4374 = vmatprep.subr.bf16.mxu0 %v4983_v31 }
 0x140   : > { %4289 = vmatpush3.bf16.msra.mxu1 %v5141_v3  ;;  %4375 = vmatpush3.bf16.msra.mxu0 %v5141_v3 }
 0x141   : > { %4290 = vmatprep.subr.bf16.mxu1 %v4983_v31  ;;  %4376 = vmatprep.subr.bf16.mxu0 %v4983_v31 }
 0x144   : > { %4291 = vmatpush3.bf16.msra.mxu1 %v5149_v14  ;;  %4377 = vmatpush3.bf16.msra.mxu0 %v5149_v14 }
 0x145   : > { %4292 = vmatprep.subr.bf16.mxu1 %v4983_v31  ;;  %4378 = vmatprep.subr.bf16.mxu0 %v4983_v31 }
 0x148   : > { %4293 = vmatpush3.bf16.msra.mxu1 %v5157_v25  ;;  %4379 = vmatpush3.bf16.msra.mxu0 %v5157_v25 }
 0x149   : > { %4294 = vmatprep.subr.bf16.mxu1 %v4983_v31  ;;  %4380 = vmatprep.subr.bf16.mxu0 %v4983_v31 }
 0x14c   : > { %4295 = vmatpush3.bf16.msra.mxu1 %v5165_v38  ;;  %4381 = vmatpush3.bf16.msra.mxu0 %v5165_v38 }
 0x14d   : > { %4296 = vmatprep.subr.bf16.mxu1 %v4983_v31  ;;  %4382 = vmatprep.subr.bf16.mxu0 %v4983_v31 }
 0x150   : > { %4297 = vmatpush3.bf16.msra.mxu1 %v5172_v46  ;;  %4383 = vmatpush3.bf16.msra.mxu0 %v5172_v46 }
 0x151   : > { %4302 = vmatprep.subr.bf16.mxu1 %v4983_v31  ;;  %4414 = vmatprep.subr.bf16.mxu0 %v4983_v31 }
 0x153   : > { %4299 = vmatmul.mubr.msk.bf16.vlgmr.msra.gmra.mrb[4].mxu1 %vm662_vm2, %v4893_v48  ;;  %4385 = vmatmul.mubr.msk.bf16.vlgmr.msra.gmra.mrb[32].mxu0 %vm662_vm2, %v4901_v51  ;;  %v4908_v48 = vld [vmem:[%s5902_s4 + $0x58] sm:$0xff]  }
 0x154   : > { %4306 = vmatprep.mubr.msk.bf16.mxu1 %vm4984_vm0, %v4983_v31  ;;  %4303 = vmatpush3.bf16.msra.mxu1 %v4894_v49 }
 0x155   : > { %4304 = vmatprep.subr.bf16.mxu1 %v4983_v31  ;;  %4418 = vmatprep.mubr.msk.bf16.mxu0 %vm4984_vm0, %v4983_v31 }
 0x156   : > { %4415 = vmatpush3.bf16.msra.mxu0 %v4907_v33 }
 0x157   : > { %4416 = vmatprep.subr.bf16.mxu0 %v4983_v31 }
 0x158   : > { %4305 = vmatpush3.bf16.msra.mxu1 %v4895_v50 }
 0x159   : > { %4310 = vmatprep.subr.bf16.mxu1 %v4983_v31 }
 0x15a   : > { %4417 = vmatpush3.bf16.msra.mxu0 %v4908_v48 }
 0x15b   : > { %4422 = vmatprep.subr.bf16.mxu0 %v4983_v31 }
 0x20a   : > { %v704_v52 = vpop.f32.mrb[0].mxu1  ;;  %v930_v53 = vpop.f32.mrb[28].mxu0 }
 0x20b   : > { %v4282_v54 = vpop.f32.mrb[1].mxu1  ;;  %v4334_v55 = vpop.f32.mrb[29].mxu0 }
 0x20c   : > { %v707_v57 = vpop.f32.mrb[2].mxu1  ;;  %v933_v58 = vpop.f32.mrb[30].mxu0 }
 0x20d   : > { %v711_v59 = vpack.c.bf16 %v707_v57, %v704_v52  ;;  %v4283_v60 = vpop.f32.mrb[3].mxu1  ;;  %v937_v61 = vpack.c.bf16 %v933_v58, %v930_v53  ;;  %v4335_v62 = vpop.f32.mrb[31].mxu0 }
 0x226   : > { %v760_v63 = vpop.f32.mrb[4].mxu1  ;;  %v1160_v12 = vpop.f32.mrb[32].mxu0 }
 0x227   : > { %v4300_v0 = vpop.f32.mrb[5].mxu1  ;;  %v4386_v13 = vpop.f32.mrb[33].mxu0 }
 0x228   : > { %v763_v1 = vpop.f32.mrb[6].mxu1  ;;  %v1163_v15 = vpop.f32.mrb[34].mxu0 }
 0x229   : > { %v767_v4 = vpack.c.bf16 %v763_v1, %v760_v63  ;;  %v4301_v5 = vpop.f32.mrb[7].mxu1  ;;  %v1167_v16 = vpack.c.bf16 %v1163_v15, %v1160_v12  ;;  %v4387_v17 = vpop.f32.mrb[35].mxu0 }
 0x22a   : > { %v4910_v5 = vld [vmem:[%s5902_s4 + $0x60] sm:$0xff]  }
 0x22b   : > { %4307 = vmatmul.mubr.msk.bf16.vlgmr.msra.gmra.mrb[8].mxu1 %vm785_vm3, %v767_v4  ;;  %v4909_v4 = vld [vmem:[%s5901_s3 + $0x30] sm:$0xff]  }
 0x22c   : > { %4311 = vmatpush3.bf16.msra.mxu1 %v4896_v2  ;;  %4314 = vmatprep.mubr.msk.bf16.mxu1 %vm4984_vm0, %v4983_v31 }
 0x22d   : > { %4312 = vmatprep.subr.bf16.mxu1 %v4983_v31 }
 0x230   : > { %4313 = vmatpush3.bf16.msra.mxu1 %v4897_v6  ;;  %v4911_v6 = vld [vmem:[%s5902_s4 + $0x68] sm:$0xff]  }
 0x231   : > { %4336 = vmatprep.subr.bf16.mxu1 %v4983_v31 }
 0x233   : > { %4315 = vmatmul.mubr.msk.bf16.vlgmr.msra.gmra.mrb[12].mxu1 %vm785_vm3, %v711_v59 }
 0x234   : > { %4337 = vmatpush3.bf16.msra.mxu1 %v4898_v7  ;;  %4340 = vmatprep.mubr.msk.bf16.mxu1 %vm4984_vm0, %v4983_v31 }
 0x235   : > { %4338 = vmatprep.subr.bf16.mxu1 %v4983_v31 }
 0x238   : > { %4339 = vmatpush3.bf16.msra.mxu1 %v4899_v8 }
 0x239   : > { %4344 = vmatprep.subr.bf16.mxu1 %v4983_v31 }
 0x23b   : > { %4341 = vmatmul.mubr.msk.bf16.vlgmr.msra.gmra.mrb[16].mxu1 %vm785_vm3, %v937_v61 }
 0x23c   : > { %4345 = vmatpush3.bf16.msra.mxu1 %v5125_v45  ;;  %4358 = vmatprep.mubr.msk.bf16.mxu1 %vm4984_vm0, %v4983_v31 }
 0x23d   : > { %4346 = vmatprep.subr.bf16.mxu1 %v4983_v31 }
 0x240   : > { %4347 = vmatpush3.bf16.msra.mxu1 %v5133_v56 }
 0x241   : > { %4348 = vmatprep.subr.bf16.mxu1 %v4983_v31 }
 0x244   : > { %4349 = vmatpush3.bf16.msra.mxu1 %v5141_v3 }
 0x245   : > { %4350 = vmatprep.subr.bf16.mxu1 %v4983_v31 }
 0x248   : > { %4351 = vmatpush3.bf16.msra.mxu1 %v5149_v14 }
 0x249   : > { %4352 = vmatprep.subr.bf16.mxu1 %v4983_v31 }
 0x24c   : > { %4353 = vmatpush3.bf16.msra.mxu1 %v5157_v25 }
 0x24d   : > { %4354 = vmatprep.subr.bf16.mxu1 %v4983_v31 }
 0x250   : > { %4355 = vmatpush3.bf16.msra.mxu1 %v5165_v38 }
 0x251   : > { %4356 = vmatprep.subr.bf16.mxu1 %v4983_v31 }
 0x254   : > { %4357 = vmatpush3.bf16.msra.mxu1 %v5172_v46 }
 0x255   : > { %4362 = vmatprep.subr.bf16.mxu1 %v4983_v31 }
 0x257   : > { %4359 = vmatmul.mubr.msk.bf16.vlgmr.msra.gmra.mrb[20].mxu1 %vm662_vm2, %v4900_v9 }
 0x258   : > { %4366 = vmatprep.mubr.msk.bf16.mxu1 %vm4984_vm0, %v4983_v31  ;;  %4363 = vmatpush3.bf16.msra.mxu1 %v4902_v10 }
 0x259   : > { %4364 = vmatprep.subr.bf16.mxu1 %v4983_v31 }
 0x25c   : > { %4365 = vmatpush3.bf16.msra.mxu1 %v4903_v11 }
 0x25d   : > { %4388 = vmatprep.subr.bf16.mxu1 %v4983_v31 }
 0x2fe   : > { %v823_v18 = vpop.f32.mrb[8].mxu1 }
 0x2ff   : > { %v4308_v19 = vpop.f32.mrb[9].mxu1 }
 0x300   : > { %v826_v20 = vpop.f32.mrb[10].mxu1  ;;  %v4912_v19 = vld [vmem:[%s5901_s3 + $0x38] sm:$0xff]  }
 0x301   : > { %v4309_v21 = vpop.f32.mrb[11].mxu1 }
 0x302   : > { %v4914_v21 = vld [vmem:[%s5902_s4 + $0x78] sm:$0xff]  }
 0x306   : > { %v879_v22 = vpop.f32.mrb[12].mxu1 }
 0x307   : > { %v880_v23 = vadd.f32 %v879_v22, %v823_v18  ;;  %v4316_v24 = vpop.f32.mrb[13].mxu1 }
 0x308   : > { %v882_v26 = vpop.f32.mrb[14].mxu1 }
 0x309   : > { %v883_v27 = vadd.f32 %v882_v26, %v826_v20  ;;  %v4317_v28 = vpop.f32.mrb[15].mxu1  ;;  %v4913_v20 = vld [vmem:[%s5902_s4 + $0x70] sm:$0xff]  }
 0x30e   : > { %v992_v29 = vpop.f32.mrb[16].mxu1 }
 0x30f   : > { %v999_v30 = vadd.f32 %v992_v29, %v880_v23  ;;  %v4342_v32 = vpop.f32.mrb[17].mxu1 }
 0x310   : > { %v995_v34 = vpop.f32.mrb[18].mxu1 }
 0x311   : > { %v1000_v35 = vadd.f32 %v995_v34, %v883_v27  ;;  %v4343_v36 = vpop.f32.mrb[19].mxu1 }
 0x312   : > { %v4915_v36 = vld [vmem:[%s5901_s3 + $0x40] sm:$0xff]  }
 0x32a   : > { %v1045_v37 = vpop.f32.mrb[20].mxu1 }
 0x32b   : > { %v4360_v39 = vpop.f32.mrb[21].mxu1 }
 0x32c   : > { %v1048_v40 = vpop.f32.mrb[22].mxu1  ;;  %v4917_v39 = vld [vmem:[%s5902_s4 + $0x88] sm:$0xff]  }
 0x32d   : > { %v1052_v42 = vpack.c.bf16 %v1048_v40, %v1045_v37  ;;  %v4361_v43 = vpop.f32.mrb[23].mxu1  ;;  %v4916_v37 = vld [vmem:[%s5902_s4 + $0x80] sm:$0xff]  }
 0x32f   : > { %4367 = vmatmul.mubr.msk.bf16.vlgmr.msra.gmra.mrb[24].mxu1 %vm785_vm3, %v1052_v42 }
 0x330   : > { %4389 = vmatpush3.bf16.msra.mxu1 %v4904_v41  ;;  %4392 = vmatprep.mubr.msk.bf16.mxu1 %vm4984_vm0, %v4983_v31 }
 0x331   : > { %4390 = vmatprep.subr.bf16.mxu1 %v4983_v31 }
 0x334   : > { %4391 = vmatpush3.bf16.msra.mxu1 %v4905_v44 }
 0x335   : > { %4396 = vmatprep.subr.bf16.mxu1 %v4983_v31 }
 0x337   : > { %4393 = vmatmul.mubr.msk.bf16.vlgmr.msra.gmra.mrb[28].mxu1 %vm785_vm3, %v1167_v16 }
 0x338   : > { %4397 = vmatpush3.bf16.msra.mxu1 %v5125_v45  ;;  %4410 = vmatprep.mubr.msk.bf16.mxu1 %vm4984_vm0, %v4983_v31 }
 0x339   : > { %4398 = vmatprep.subr.bf16.mxu1 %v4983_v31 }
 0x33c   : > { %4399 = vmatpush3.bf16.msra.mxu1 %v5133_v56 }
 0x33d   : > { %4400 = vmatprep.subr.bf16.mxu1 %v4983_v31 }
 0x340   : > { %4401 = vmatpush3.bf16.msra.mxu1 %v5141_v3 }
 0x341   : > { %4402 = vmatprep.subr.bf16.mxu1 %v4983_v31 }
 0x344   : > { %4403 = vmatpush3.bf16.msra.mxu1 %v5149_v14 }
 0x345   : > { %4404 = vmatprep.subr.bf16.mxu1 %v4983_v31 }
 0x348   : > { %4405 = vmatpush3.bf16.msra.mxu1 %v5157_v25 }
 0x349   : > { %4406 = vmatprep.subr.bf16.mxu1 %v4983_v31 }
 0x34c   : > { %4407 = vmatpush3.bf16.msra.mxu1 %v5165_v38 }
 0x34d   : > { %4408 = vmatprep.subr.bf16.mxu1 %v4983_v31 }
 0x350   : > { %4409 = vmatpush3.bf16.msra.mxu1 %v5172_v46 }
 0x351   : > { %4440 = vmatprep.subr.bf16.mxu1 %v4983_v31 }
 0x353   : > { %4411 = vmatmul.mubr.msk.bf16.vlgmr.msra.gmra.mrb[32].mxu1 %vm662_vm2, %v4906_v47 }
 0x354   : > { %4444 = vmatprep.mubr.msk.bf16.mxu1 %vm4984_vm0, %v4983_v31  ;;  %4441 = vmatpush3.bf16.msra.mxu1 %v4910_v5  ;;  %v4922_v5 = vld [vmem:[%s5902_s4 + $0xa0] sm:$0xff]  }
 0x355   : > { %4442 = vmatprep.subr.bf16.mxu1 %v4983_v31 }
 0x358   : > { %4443 = vmatpush3.bf16.msra.mxu1 %v4911_v6  ;;  %v4923_v6 = vld [vmem:[%s5902_s4 + $0xa8] sm:$0xff]  }
 0x359   : > { %4448 = vmatprep.subr.bf16.mxu1 %v4983_v31 }
 0x402   : > { %v1107_v49 = vpop.f32.mrb[24].mxu1 }
 0x403   : > { %v1114_v50 = vadd.f32 %v1107_v49, %v999_v30  ;;  %v4368_v51 = vpop.f32.mrb[25].mxu1 }
 0x404   : > { %v1110_v52 = vpop.f32.mrb[26].mxu1 }
 0x405   : > { %v1115_v53 = vadd.f32 %v1110_v52, %v1000_v35  ;;  %v4369_v54 = vpop.f32.mrb[27].mxu1  ;;  %v4918_v52 = vld [vmem:[%s5901_s3 + $0x48] sm:$0xff]  }
 0x406   : > { %v4920_v54 = vld [vmem:[%s5902_s4 + $0x98] sm:$0xff]  }
 0x40a   : > { %v1222_v55 = vpop.f32.mrb[28].mxu1 }
 0x40b   : > { %v1229_v57 = vadd.f32 %v1222_v55, %v1114_v50  ;;  %v4394_v58 = vpop.f32.mrb[29].mxu1 }
 0x40c   : > { %v1225_v59 = vpop.f32.mrb[30].mxu1 }
 0x40d   : > { %v1230_v60 = vadd.f32 %v1225_v59, %v1115_v53  ;;  %v4395_v61 = vpop.f32.mrb[31].mxu1  ;;  %v4919_v53 = vld [vmem:[%s5902_s4 + $0x90] sm:$0xff]  }
 0x426   : > { %v1275_v62 = vpop.f32.mrb[32].mxu1 }
 0x427   : > { %v4412_v63 = vpop.f32.mrb[33].mxu1 }
 0x428   : > { %v1278_v0 = vpop.f32.mrb[34].mxu1 }
 0x429   : > { %v1282_v1 = vpack.c.bf16 %v1278_v0, %v1275_v62  ;;  %v4413_v2 = vpop.f32.mrb[35].mxu1 }
 0x42b   : > { %4419 = vmatmul.mubr.msk.bf16.vlgmr.msra.gmra.mrb[36].mxu0 %vm785_vm3, %v1282_v1 }
 0x42c   : > { %4423 = vmatpush3.bf16.msra.mxu0 %v5125_v45  ;;  %4436 = vmatprep.mubr.msk.bf16.mxu0 %vm4984_vm0, %v4983_v31 }
 0x42d   : > { %4424 = vmatprep.subr.bf16.mxu0 %v4983_v31 }
 0x430   : > { %4425 = vmatpush3.bf16.msra.mxu0 %v5133_v56 }
 0x431   : > { %4426 = vmatprep.subr.bf16.mxu0 %v4983_v31 }
 0x434   : > { %4427 = vmatpush3.bf16.msra.mxu0 %v5141_v3 }
 0x435   : > { %4428 = vmatprep.subr.bf16.mxu0 %v4983_v31 }
 0x438   : > { %4429 = vmatpush3.bf16.msra.mxu0 %v5149_v14 }
 0x439   : > { %4430 = vmatprep.subr.bf16.mxu0 %v4983_v31 }
 0x43c   : > { %4431 = vmatpush3.bf16.msra.mxu0 %v5157_v25 }
 0x43d   : > { %4432 = vmatprep.subr.bf16.mxu0 %v4983_v31 }
 0x440   : > { %4433 = vmatpush3.bf16.msra.mxu0 %v5165_v38 }
 0x441   : > { %4434 = vmatprep.subr.bf16.mxu0 %v4983_v31 }
 0x444   : > { %4435 = vmatpush3.bf16.msra.mxu0 %v5172_v46 }
 0x445   : > { %4466 = vmatprep.subr.bf16.mxu0 %v4983_v31 }
 0x447   : > { %4437 = vmatmul.mubr.msk.bf16.vlgmr.msra.gmra.mrb[40].mxu0 %vm662_vm2, %v4909_v4  ;;  %v4921_v4 = vld [vmem:[%s5901_s3 + $0x50] sm:$0xff]  }
 0x448   : > { %4470 = vmatprep.mubr.msk.bf16.mxu0 %vm4984_vm0, %v4983_v31  ;;  %4467 = vmatpush3.bf16.msra.mxu0 %v4913_v20  ;;  %v4925_v20 = vld [vmem:[%s5902_s4 + $0xb0] sm:$0xff]  }
 0x449   : > { %4468 = vmatprep.subr.bf16.mxu0 %v4983_v31 }
 0x44c   : > { %4469 = vmatpush3.bf16.msra.mxu0 %v4914_v21  ;;  %v4926_v21 = vld [vmem:[%s5902_s4 + $0xb8] sm:$0xff]  }
 0x44d   : > { %4474 = vmatprep.subr.bf16.mxu0 %v4983_v31 }
 0x4fe   : > { %v1337_v7 = vpop.f32.mrb[36].mxu0 }
 0x4ff   : > { %v1344_v8 = vadd.f32 %v1337_v7, %v1229_v57  ;;  %v4420_v9 = vpop.f32.mrb[37].mxu0 }
 0x500   : > { %v1340_v10 = vpop.f32.mrb[38].mxu0 }
 0x501   : > { %v1345_v11 = vadd.f32 %v1340_v10, %v1230_v60  ;;  %v4421_v12 = vpop.f32.mrb[39].mxu0 }
 0x51a   : > { %v1390_v13 = vpop.f32.mrb[40].mxu0 }
 0x51b   : > { %v4438_v15 = vpop.f32.mrb[41].mxu0 }
 0x51c   : > { %v1393_v16 = vpop.f32.mrb[42].mxu0 }
 0x51d   : > { %v1397_v17 = vpack.c.bf16 %v1393_v16, %v1390_v13  ;;  %v4439_v18 = vpop.f32.mrb[43].mxu0 }
 0x51f   : > { %4445 = vmatmul.mubr.msk.bf16.vlgmr.msra.gmra.mrb[36].mxu1 %vm785_vm3, %v1397_v17 }
 0x520   : > { %4449 = vmatpush3.bf16.msra.mxu1 %v5125_v45  ;;  %4462 = vmatprep.mubr.msk.bf16.mxu1 %vm4984_vm0, %v4983_v31 }
 0x521   : > { %4450 = vmatprep.subr.bf16.mxu1 %v4983_v31 }
 0x524   : > { %4451 = vmatpush3.bf16.msra.mxu1 %v5133_v56 }
 0x525   : > { %4452 = vmatprep.subr.bf16.mxu1 %v4983_v31 }
 0x528   : > { %4453 = vmatpush3.bf16.msra.mxu1 %v5141_v3 }
 0x529   : > { %4454 = vmatprep.subr.bf16.mxu1 %v4983_v31 }
 0x52c   : > { %4455 = vmatpush3.bf16.msra.mxu1 %v5149_v14 }
 0x52d   : > { %4456 = vmatprep.subr.bf16.mxu1 %v4983_v31 }
 0x530   : > { %4457 = vmatpush3.bf16.msra.mxu1 %v5157_v25 }
 0x531   : > { %4458 = vmatprep.subr.bf16.mxu1 %v4983_v31 }
 0x534   : > { %4459 = vmatpush3.bf16.msra.mxu1 %v5165_v38 }
 0x535   : > { %4460 = vmatprep.subr.bf16.mxu1 %v4983_v31 }
 0x538   : > { %4461 = vmatpush3.bf16.msra.mxu1 %v5172_v46 }
 0x539   : > { %4492 = vmatprep.subr.bf16.mxu1 %v4983_v31 }
 0x53b   : > { %4463 = vmatmul.mubr.msk.bf16.vlgmr.msra.gmra.mrb[40].mxu1 %vm662_vm2, %v4912_v19  ;;  %v4924_v19 = vld [vmem:[%s5901_s3 + $0x58] sm:$0xff]  }
 0x53c   : > { %4496 = vmatprep.mubr.msk.bf16.mxu1 %vm4984_vm0, %v4983_v31  ;;  %4493 = vmatpush3.bf16.msra.mxu1 %v4916_v37  ;;  %v4928_v37 = vld [vmem:[%s5902_s4 + $0xc0] sm:$0xff]  }
 0x53d   : > { %4494 = vmatprep.subr.bf16.mxu1 %v4983_v31 }
 0x540   : > { %4495 = vmatpush3.bf16.msra.mxu1 %v4917_v39  ;;  %v4929_v39 = vld [vmem:[%s5902_s4 + $0xc8] sm:$0xff]  }
 0x541   : > { %4500 = vmatprep.subr.bf16.mxu1 %v4983_v31 }
 0x5f2   : > { %v1452_v22 = vpop.f32.mrb[36].mxu1 }
 0x5f3   : > { %v1459_v23 = vadd.f32 %v1452_v22, %v1344_v8  ;;  %v4446_v24 = vpop.f32.mrb[37].mxu1 }
 0x5f4   : > { %v1455_v26 = vpop.f32.mrb[38].mxu1 }
 0x5f5   : > { %v1460_v27 = vadd.f32 %v1455_v26, %v1345_v11  ;;  %v4447_v28 = vpop.f32.mrb[39].mxu1 }
 0x60e   : > { %v1505_v29 = vpop.f32.mrb[40].mxu1 }
 0x60f   : > { %v4464_v30 = vpop.f32.mrb[41].mxu1 }
 0x610   : > { %v1508_v32 = vpop.f32.mrb[42].mxu1 }
 0x611   : > { %v1512_v34 = vpack.c.bf16 %v1508_v32, %v1505_v29  ;;  %v4465_v35 = vpop.f32.mrb[43].mxu1 }
 0x613   : > { %4471 = vmatmul.mubr.msk.bf16.vlgmr.msra.gmra.mrb[44].mxu0 %vm785_vm3, %v1512_v34 }
 0x614   : > { %4475 = vmatpush3.bf16.msra.mxu0 %v5125_v45  ;;  %4488 = vmatprep.mubr.msk.bf16.mxu0 %vm4984_vm0, %v4983_v31 }
 0x615   : > { %4476 = vmatprep.subr.bf16.mxu0 %v4983_v31 }
 0x618   : > { %4477 = vmatpush3.bf16.msra.mxu0 %v5133_v56 }
 0x619   : > { %4478 = vmatprep.subr.bf16.mxu0 %v4983_v31 }
 0x61c   : > { %4479 = vmatpush3.bf16.msra.mxu0 %v5141_v3 }
 0x61d   : > { %4480 = vmatprep.subr.bf16.mxu0 %v4983_v31 }
 0x620   : > { %4481 = vmatpush3.bf16.msra.mxu0 %v5149_v14 }
 0x621   : > { %4482 = vmatprep.subr.bf16.mxu0 %v4983_v31 }
 0x624   : > { %4483 = vmatpush3.bf16.msra.mxu0 %v5157_v25 }
 0x625   : > { %4484 = vmatprep.subr.bf16.mxu0 %v4983_v31 }
 0x628   : > { %4485 = vmatpush3.bf16.msra.mxu0 %v5165_v38 }
 0x629   : > { %4486 = vmatprep.subr.bf16.mxu0 %v4983_v31 }
 0x62c   : > { %4487 = vmatpush3.bf16.msra.mxu0 %v5172_v46 }
 0x62d   : > { %4518 = vmatprep.subr.bf16.mxu0 %v4983_v31 }
 0x62f   : > { %4489 = vmatmul.mubr.msk.bf16.vlgmr.msra.gmra.mrb[48].mxu0 %vm662_vm2, %v4915_v36  ;;  %v4927_v36 = vld [vmem:[%s5901_s3 + $0x60] sm:$0xff]  }
 0x630   : > { %4522 = vmatprep.mubr.msk.bf16.mxu0 %vm4984_vm0, %v4983_v31  ;;  %4519 = vmatpush3.bf16.msra.mxu0 %v4919_v53  ;;  %v4931_v53 = vld [vmem:[%s5902_s4 + $0xd0] sm:$0xff]  }
 0x631   : > { %4520 = vmatprep.subr.bf16.mxu0 %v4983_v31 }
 0x634   : > { %4521 = vmatpush3.bf16.msra.mxu0 %v4920_v54  ;;  %v4932_v54 = vld [vmem:[%s5902_s4 + $0xd8] sm:$0xff]  }
 0x635   : > { %4526 = vmatprep.subr.bf16.mxu0 %v4983_v31 }
 0x6e6   : > { %v1567_v40 = vpop.f32.mrb[44].mxu0 }
 0x6e7   : > { %v1574_v41 = vadd.f32 %v1567_v40, %v1459_v23  ;;  %v4472_v42 = vpop.f32.mrb[45].mxu0 }
 0x6e8   : > { %v1570_v43 = vpop.f32.mrb[46].mxu0 }
 0x6e9   : > { %v1575_v44 = vadd.f32 %v1570_v43, %v1460_v27  ;;  %v4473_v47 = vpop.f32.mrb[47].mxu0 }
 0x702   : > { %v1620_v33 = vpop.f32.mrb[48].mxu0 }
 0x703   : > { %v4490_v48 = vpop.f32.mrb[49].mxu0 }
 0x704   : > { %v1623_v49 = vpop.f32.mrb[50].mxu0 }
 0x705   : > { %v1627_v50 = vpack.c.bf16 %v1623_v49, %v1620_v33  ;;  %v4491_v51 = vpop.f32.mrb[51].mxu0 }
 0x707   : > { %4497 = vmatmul.mubr.msk.bf16.vlgmr.msra.gmra.mrb[44].mxu1 %vm785_vm3, %v1627_v50 }
 0x708   : > { %4501 = vmatpush3.bf16.msra.mxu1 %v5125_v45  ;;  %4514 = vmatprep.mubr.msk.bf16.mxu1 %vm4984_vm0, %v4983_v31 }
 0x709   : > { %4502 = vmatprep.subr.bf16.mxu1 %v4983_v31 }
 0x70c   : > { %4503 = vmatpush3.bf16.msra.mxu1 %v5133_v56 }
 0x70d   : > { %4504 = vmatprep.subr.bf16.mxu1 %v4983_v31 }
 0x710   : > { %4505 = vmatpush3.bf16.msra.mxu1 %v5141_v3 }
 0x711   : > { %4506 = vmatprep.subr.bf16.mxu1 %v4983_v31 }
 0x714   : > { %4507 = vmatpush3.bf16.msra.mxu1 %v5149_v14 }
 0x715   : > { %4508 = vmatprep.subr.bf16.mxu1 %v4983_v31 }
 0x718   : > { %4509 = vmatpush3.bf16.msra.mxu1 %v5157_v25 }
 0x719   : > { %4510 = vmatprep.subr.bf16.mxu1 %v4983_v31 }
 0x71c   : > { %4511 = vmatpush3.bf16.msra.mxu1 %v5165_v38 }
 0x71d   : > { %4512 = vmatprep.subr.bf16.mxu1 %v4983_v31 }
 0x720   : > { %4513 = vmatpush3.bf16.msra.mxu1 %v5172_v46 }
 0x721   : > { %4544 = vmatprep.subr.bf16.mxu1 %v4983_v31 }
 0x723   : > { %4515 = vmatmul.mubr.msk.bf16.vlgmr.msra.gmra.mrb[48].mxu1 %vm662_vm2, %v4918_v52  ;;  %v4930_v52 = vld [vmem:[%s5901_s3 + $0x68] sm:$0xff]  }
 0x724   : > { %4548 = vmatprep.mubr.msk.bf16.mxu1 %vm4984_vm0, %v4983_v31  ;;  %4545 = vmatpush3.bf16.msra.mxu1 %v4922_v5  ;;  %v4934_v5 = vld [vmem:[%s5902_s4 + $0xe0] sm:$0xff]  }
 0x725   : > { %4546 = vmatprep.subr.bf16.mxu1 %v4983_v31 }
 0x728   : > { %4547 = vmatpush3.bf16.msra.mxu1 %v4923_v6  ;;  %v4935_v6 = vld [vmem:[%s5902_s4 + $0xe8] sm:$0xff]  }
 0x729   : > { %4552 = vmatprep.subr.bf16.mxu1 %v4983_v31 }
 0x7da   : > { %v1682_v55 = vpop.f32.mrb[44].mxu1 }
 0x7db   : > { %v1689_v57 = vadd.f32 %v1682_v55, %v1574_v41  ;;  %v4498_v58 = vpop.f32.mrb[45].mxu1 }
 0x7dc   : > { %v1685_v59 = vpop.f32.mrb[46].mxu1 }
 0x7dd   : > { %v1690_v60 = vadd.f32 %v1685_v59, %v1575_v44  ;;  %v4499_v61 = vpop.f32.mrb[47].mxu1 }
 0x7f6   : > { %v1735_v62 = vpop.f32.mrb[48].mxu1 }
 0x7f7   : > { %v4516_v63 = vpop.f32.mrb[49].mxu1 }
 0x7f8   : > { %v1738_v0 = vpop.f32.mrb[50].mxu1 }
 0x7f9   : > { %v1742_v1 = vpack.c.bf16 %v1738_v0, %v1735_v62  ;;  %v4517_v2 = vpop.f32.mrb[51].mxu1 }
 0x7fb   : > { %4523 = vmatmul.mubr.msk.bf16.vlgmr.msra.gmra.mrb[52].mxu0 %vm785_vm3, %v1742_v1 }
 0x7fc   : > { %4527 = vmatpush3.bf16.msra.mxu0 %v5125_v45  ;;  %4540 = vmatprep.mubr.msk.bf16.mxu0 %vm4984_vm0, %v4983_v31 }
 0x7fd   : > { %4528 = vmatprep.subr.bf16.mxu0 %v4983_v31 }
 0x800   : > { %4529 = vmatpush3.bf16.msra.mxu0 %v5133_v56 }
 0x801   : > { %4530 = vmatprep.subr.bf16.mxu0 %v4983_v31 }
 0x804   : > { %4531 = vmatpush3.bf16.msra.mxu0 %v5141_v3 }
 0x805   : > { %4532 = vmatprep.subr.bf16.mxu0 %v4983_v31 }
 0x808   : > { %4533 = vmatpush3.bf16.msra.mxu0 %v5149_v14 }
 0x809   : > { %4534 = vmatprep.subr.bf16.mxu0 %v4983_v31 }
 0x80c   : > { %4535 = vmatpush3.bf16.msra.mxu0 %v5157_v25 }
 0x80d   : > { %4536 = vmatprep.subr.bf16.mxu0 %v4983_v31 }
 0x810   : > { %4537 = vmatpush3.bf16.msra.mxu0 %v5165_v38 }
 0x811   : > { %4538 = vmatprep.subr.bf16.mxu0 %v4983_v31 }
 0x814   : > { %4539 = vmatpush3.bf16.msra.mxu0 %v5172_v46 }
 0x815   : > { %4570 = vmatprep.subr.bf16.mxu0 %v4983_v31 }
 0x817   : > { %4541 = vmatmul.mubr.msk.bf16.vlgmr.msra.gmra.mrb[56].mxu0 %vm662_vm2, %v4921_v4  ;;  %v4933_v4 = vld [vmem:[%s5901_s3 + $0x70] sm:$0xff]  }
 0x818   : > { %4574 = vmatprep.mubr.msk.bf16.mxu0 %vm4984_vm0, %v4983_v31  ;;  %4571 = vmatpush3.bf16.msra.mxu0 %v4925_v20 }
 0x819   : > { %4572 = vmatprep.subr.bf16.mxu0 %v4983_v31 }
 0x81c   : > { %4573 = vmatpush3.bf16.msra.mxu0 %v4926_v21 }
 0x81d   : > { %4578 = vmatprep.subr.bf16.mxu0 %v4983_v31 }
 0x8ce   : > { %v1797_v7 = vpop.f32.mrb[52].mxu0 }
 0x8cf   : > { %v1804_v8 = vadd.f32 %v1797_v7, %v1689_v57  ;;  %v4524_v9 = vpop.f32.mrb[53].mxu0 }
 0x8d0   : > { %v1800_v10 = vpop.f32.mrb[54].mxu0 }
 0x8d1   : > { %v1805_v11 = vadd.f32 %v1800_v10, %v1690_v60  ;;  %v4525_v12 = vpop.f32.mrb[55].mxu0 }
 0x8ea   : > { %v1850_v13 = vpop.f32.mrb[56].mxu0 }
 0x8eb   : > { %v4542_v15 = vpop.f32.mrb[57].mxu0 }
 0x8ec   : > { %v1853_v16 = vpop.f32.mrb[58].mxu0 }
 0x8ed   : > { %v1857_v17 = vpack.c.bf16 %v1853_v16, %v1850_v13  ;;  %v4543_v18 = vpop.f32.mrb[59].mxu0 }
 0x8ef   : > { %4549 = vmatmul.mubr.msk.bf16.vlgmr.msra.gmra.mrb[52].mxu1 %vm785_vm3, %v1857_v17 }
 0x8f0   : > { %4553 = vmatpush3.bf16.msra.mxu1 %v5125_v45  ;;  %4566 = vmatprep.mubr.msk.bf16.mxu1 %vm4984_vm0, %v4983_v31 }
 0x8f1   : > { %4554 = vmatprep.subr.bf16.mxu1 %v4983_v31 }
 0x8f4   : > { %4555 = vmatpush3.bf16.msra.mxu1 %v5133_v56 }
 0x8f5   : > { %4556 = vmatprep.subr.bf16.mxu1 %v4983_v31 }
 0x8f8   : > { %4557 = vmatpush3.bf16.msra.mxu1 %v5141_v3 }
 0x8f9   : > { %4558 = vmatprep.subr.bf16.mxu1 %v4983_v31 }
 0x8fc   : > { %4559 = vmatpush3.bf16.msra.mxu1 %v5149_v14 }
 0x8fd   : > { %4560 = vmatprep.subr.bf16.mxu1 %v4983_v31 }
 0x900   : > { %4561 = vmatpush3.bf16.msra.mxu1 %v5157_v25 }
 0x901   : > { %4562 = vmatprep.subr.bf16.mxu1 %v4983_v31 }
 0x904   : > { %4563 = vmatpush3.bf16.msra.mxu1 %v5165_v38 }
 0x905   : > { %4564 = vmatprep.subr.bf16.mxu1 %v4983_v31 }
 0x908   : > { %4565 = vmatpush3.bf16.msra.mxu1 %v5172_v46 }
 0x909   : > { %4596 = vmatprep.subr.bf16.mxu1 %v4983_v31 }
 0x90b   : > { %4567 = vmatmul.mubr.msk.bf16.vlgmr.msra.gmra.mrb[56].mxu1 %vm662_vm2, %v4924_v19 }
 0x90c   : > { %4600 = vmatprep.mubr.msk.bf16.mxu1 %vm4984_vm0, %v4983_v31  ;;  %4597 = vmatpush3.bf16.msra.mxu1 %v4928_v37 }
 0x90d   : > { %4598 = vmatprep.subr.bf16.mxu1 %v4983_v31 }
 0x910   : > { %4599 = vmatpush3.bf16.msra.mxu1 %v4929_v39 }
 0x911   : > { %4604 = vmatprep.subr.bf16.mxu1 %v4983_v31 }
 0x9c2   : > { %v1912_v22 = vpop.f32.mrb[52].mxu1 }
 0x9c3   : > { %v1919_v23 = vadd.f32 %v1912_v22, %v1804_v8  ;;  %v4550_v24 = vpop.f32.mrb[53].mxu1 }
 0x9c4   : > { %v1915_v26 = vpop.f32.mrb[54].mxu1 }
 0x9c5   : > { %v1920_v27 = vadd.f32 %v1915_v26, %v1805_v11  ;;  %v4551_v28 = vpop.f32.mrb[55].mxu1 }
 0x9c6   : > { %v4943_v28 = vld [vmem:[%s5905_s7 + $0x28] sm:$0xff]  }
 0x9de   : > { %v1965_v29 = vpop.f32.mrb[56].mxu1 }
 0x9df   : > { %v4568_v30 = vpop.f32.mrb[57].mxu1 }
 0x9e0   : > { %v1968_v32 = vpop.f32.mrb[58].mxu1  ;;  %v3847_v30 = vld [vmem:[%s5903_s5] ss:$0 sm:$0xff] }
 0x9e1   : > { %v1972_v34 = vpack.c.bf16 %v1968_v32, %v1965_v29  ;;  %v4569_v35 = vpop.f32.mrb[59].mxu1 }
 0x9e3   : > { %4575 = vmatmul.mubr.msk.bf16.vlgmr.msra.gmra.mrb[60].mxu0 %vm785_vm3, %v1972_v34 }
 0x9e4   : > { %4579 = vmatpush3.bf16.msra.mxu0 %v5125_v45  ;;  %4592 = vmatprep.mubr.msk.bf16.mxu0 %vm4984_vm0, %v4983_v31 }
 0x9e5   : > { %4580 = vmatprep.subr.bf16.mxu0 %v4983_v31 }
 0x9e8   : > { %4581 = vmatpush3.bf16.msra.mxu0 %v5133_v56 }
 0x9e9   : > { %4582 = vmatprep.subr.bf16.mxu0 %v4983_v31 }
 0x9ec   : > { %4583 = vmatpush3.bf16.msra.mxu0 %v5141_v3 }
 0x9ed   : > { %4584 = vmatprep.subr.bf16.mxu0 %v4983_v31 }
 0x9f0   : > { %4585 = vmatpush3.bf16.msra.mxu0 %v5149_v14 }
 0x9f1   : > { %4586 = vmatprep.subr.bf16.mxu0 %v4983_v31 }
 0x9f4   : > { %4587 = vmatpush3.bf16.msra.mxu0 %v5157_v25 }
 0x9f5   : > { %4588 = vmatprep.subr.bf16.mxu0 %v4983_v31 }
 0x9f8   : > { %4589 = vmatpush3.bf16.msra.mxu0 %v5165_v38 }
 0x9f9   : > { %4590 = vmatprep.subr.bf16.mxu0 %v4983_v31 }
 0x9fc   : > { %4591 = vmatpush3.bf16.msra.mxu0 %v5172_v46 }
 0x9fd   : > { %4622 = vmatprep.subr.bf16.mxu0 %v4983_v31 }
 0x9ff   : > { %4593 = vmatmul.mubr.msk.bf16.vlgmr.msra.gmra.mrb[64].mxu0 %vm662_vm2, %v4927_v36 }
 0xa00   : > { %4626 = vmatprep.mubr.msk.bf16.mxu0 %vm4984_vm0, %v4983_v31  ;;  %4623 = vmatpush3.bf16.msra.mxu0 %v4931_v53 }
 0xa01   : > { %4624 = vmatprep.subr.bf16.mxu0 %v4983_v31 }
 0xa04   : > { %4625 = vmatpush3.bf16.msra.mxu0 %v4932_v54 }
 0xa05   : > { %4630 = vmatprep.subr.bf16.mxu0 %v4983_v31 }
 0xab6   : > { %v2027_v40 = vpop.f32.mrb[60].mxu0 }
 0xab7   : > { %v2034_v41 = vadd.f32 %v2027_v40, %v1919_v23  ;;  %v4576_v42 = vpop.f32.mrb[61].mxu0 }
 0xab8   : > { %v2030_v43 = vpop.f32.mrb[62].mxu0 }
 0xab9   : > { %v2035_v44 = vadd.f32 %v2030_v43, %v1920_v27  ;;  %v4577_v47 = vpop.f32.mrb[63].mxu0  ;;  %v4941_v27 = vld [vmem:[%s5905_s7 + $0x20] sm:$0xff]  }
 0xaba   : > { %v2562_v47 = vld [vmem:[%s5904_s6 + $0x4] sm:$0xf] }
 0xad2   : > { %v2080_v33 = vpop.f32.mrb[64].mxu0 }
 0xad3   : > { %v4594_v48 = vpop.f32.mrb[65].mxu0 }
 0xad4   : > { %v2083_v49 = vpop.f32.mrb[66].mxu0  ;;  %v4940_v48 = vld [vmem:[%s5905_s7 + $0x8] sm:$0xff]  }
 0xad5   : > { %v2087_v50 = vpack.c.bf16 %v2083_v49, %v2080_v33  ;;  %v4595_v51 = vpop.f32.mrb[67].mxu0  ;;  %v4939_v33 = vld [vmem:[%s5905_s7] sm:$0xff]   ;;  %v4942_v49 = vld [vmem:[%s5905_s7 + $0x10] sm:$0xff]  }
 0xad6   : > { %v4945_v51 = vld [vmem:[%s5905_s7 + $0x30] sm:$0xff]  }
 0xad7   : > { %4601 = vmatmul.mubr.msk.bf16.vlgmr.msra.gmra.mrb[60].mxu1 %vm785_vm3, %v2087_v50  ;;  %v4944_v50 = vld [vmem:[%s5905_s7 + $0x18] sm:$0xff]  }
 0xad8   : > { %4605 = vmatpush3.bf16.msra.mxu1 %v5125_v45  ;;  %4618 = vmatprep.mubr.msk.bf16.mxu1 %vm4984_vm0, %v4983_v31 }
 0xad9   : > { %4606 = vmatprep.subr.bf16.mxu1 %v4983_v31 }
 0xadc   : > { %4607 = vmatpush3.bf16.msra.mxu1 %v5133_v56 }
 0xadd   : > { %4608 = vmatprep.subr.bf16.mxu1 %v4983_v31 }
 0xae0   : > { %4609 = vmatpush3.bf16.msra.mxu1 %v5141_v3 }
 0xae1   : > { %4610 = vmatprep.subr.bf16.mxu1 %v4983_v31 }
 0xae4   : > { %4611 = vmatpush3.bf16.msra.mxu1 %v5149_v14 }
 0xae5   : > { %4612 = vmatprep.subr.bf16.mxu1 %v4983_v31 }
 0xae8   : > { %4613 = vmatpush3.bf16.msra.mxu1 %v5157_v25 }
 0xae9   : > { %4614 = vmatprep.subr.bf16.mxu1 %v4983_v31 }
 0xaec   : > { %4615 = vmatpush3.bf16.msra.mxu1 %v5165_v38 }
 0xaed   : > { %4616 = vmatprep.subr.bf16.mxu1 %v4983_v31 }
 0xaf0   : > { %4617 = vmatpush3.bf16.msra.mxu1 %v5172_v46 }
 0xaf1   : > { %4648 = vmatprep.subr.bf16.mxu1 %v4983_v31 }
 0xaf3   : > { %4619 = vmatmul.mubr.msk.bf16.vlgmr.msra.gmra.mrb[64].mxu1 %vm662_vm2, %v4930_v52  ;;  %v4946_v52 = vld [vmem:[%s5905_s7 + $0x38] sm:$0xff]  }
 0xaf4   : > { %4652 = vmatprep.mubr.msk.bf16.mxu1 %vm4984_vm0, %v4983_v31  ;;  %4649 = vmatpush3.bf16.msra.mxu1 %v4934_v5  ;;  %v4949_v5 = vld [vmem:[%s5905_s7 + $0x50] sm:$0xff]  }
 0xaf5   : > { %4650 = vmatprep.subr.bf16.mxu1 %v4983_v31 }
 0xaf8   : > { %4651 = vmatpush3.bf16.msra.mxu1 %v4935_v6  ;;  %v4950_v6 = vld [vmem:[%s5905_s7 + $0x60] sm:$0xff]  }
 0xaf9   : > { %4656 = vmatprep.subr.bf16.mxu1 %v4983_v31 }
 0xbaa   : > { %v2142_v55 = vpop.f32.mrb[60].mxu1 }
 0xbab   : > { %v2149_v57 = vadd.f32 %v2142_v55, %v2034_v41  ;;  %v4602_v58 = vpop.f32.mrb[61].mxu1 }
 0xbac   : > { %v2145_v59 = vpop.f32.mrb[62].mxu1 }
 0xbad   : > { %v2150_v60 = vadd.f32 %v2145_v59, %v2035_v44  ;;  %v4603_v61 = vpop.f32.mrb[63].mxu1  ;;  %v2508_v44 = vld [vmem:[%s5904_s6] sm:$0xf] }
 0xbc6   : > { %v2195_v62 = vpop.f32.mrb[64].mxu1 }
 0xbc7   : > { %v4620_v63 = vpop.f32.mrb[65].mxu1 }
 0xbc8   : > { %v2198_v0 = vpop.f32.mrb[66].mxu1 }
 0xbc9   : > { %v2202_v1 = vpack.c.bf16 %v2198_v0, %v2195_v62  ;;  %v4621_v2 = vpop.f32.mrb[67].mxu1  ;;  %v2751_v0 = vld [vmem:[%s5904_s6 + $0x8] sm:$0xf] }
 0xbca   : > { %v4947_v2 = vld [vmem:[%s5905_s7 + $0x40] sm:$0xff]  }
 0xbcb   : > { %4627 = vmatmul.mubr.msk.bf16.vlgmr.msra.gmra.mrb[68].mxu0 %vm785_vm3, %v2202_v1  ;;  %v2873_v1 = vld [vmem:[%s5904_s6 + $0xc] sm:$0xf] }
 0xbcc   : > { %4631 = vmatpush3.bf16.msra.mxu0 %v5125_v45  ;;  %4644 = vmatprep.mubr.msk.bf16.mxu0 %vm4984_vm0, %v4983_v31 }
 0xbcd   : > { %4632 = vmatprep.subr.bf16.mxu0 %v4983_v31 }
 0xbd0   : > { %4633 = vmatpush3.bf16.msra.mxu0 %v5133_v56 }
 0xbd1   : > { %4634 = vmatprep.subr.bf16.mxu0 %v4983_v31 }
 0xbd4   : > { %4635 = vmatpush3.bf16.msra.mxu0 %v5141_v3 }
 0xbd5   : > { %4636 = vmatprep.subr.bf16.mxu0 %v4983_v31 }
 0xbd8   : > { %4637 = vmatpush3.bf16.msra.mxu0 %v5149_v14 }
 0xbd9   : > { %4638 = vmatprep.subr.bf16.mxu0 %v4983_v31 }
 0xbdc   : > { %4639 = vmatpush3.bf16.msra.mxu0 %v5157_v25 }
 0xbdd   : > { %4640 = vmatprep.subr.bf16.mxu0 %v4983_v31 }
 0xbe0   : > { %4641 = vmatpush3.bf16.msra.mxu0 %v5165_v38 }
 0xbe1   : > { %4642 = vmatprep.subr.bf16.mxu0 %v4983_v31 }
 0xbe4   : > { %4643 = vmatpush3.bf16.msra.mxu0 %v5172_v46 }
 0xbe5   : > { %4674 = vmatprep.subr.bf16.mxu0 %v4983_v31 }
 0xbe7   : > { %4645 = vmatmul.mubr.msk.bf16.vlgmr.msra.gmra.mrb[72].mxu0 %vm662_vm2, %v4933_v4  ;;  %v4948_v4 = vld [vmem:[%s5905_s7 + $0x48] sm:$0xff]  }
 0xbe8   : > { %4678 = vmatprep.mubr.msk.bf16.mxu0 %vm4984_vm0, %v4983_v31 }
 0xc9e   : > { %v2257_v7 = vpop.f32.mrb[68].mxu0 }
 0xc9f   : > { %v2264_v8 = vadd.f32 %v2257_v7, %v2149_v57  ;;  %v4628_v9 = vpop.f32.mrb[69].mxu0  ;;  %v4951_v7 = vld [vmem:[%s5905_s7 + $0x58] sm:$0xff]  }
 0xca0   : > { %v2260_v10 = vpop.f32.mrb[70].mxu0  ;;  %v4953_v9 = vld [vmem:[%s5905_s7 + $0x70] sm:$0xff]  }
 0xca1   : > { %v2265_v11 = vadd.f32 %v2260_v10, %v2150_v60  ;;  %v4629_v12 = vpop.f32.mrb[71].mxu0  ;;  %v4954_v10 = vld [vmem:[%s5905_s7 + $0x78] sm:$0xff]  }
 0xcba   : > { %v2310_v13 = vpop.f32.mrb[72].mxu0 }
 0xcbb   : > { %v4646_v15 = vpop.f32.mrb[73].mxu0 }
 0xcbc   : > { %v2313_v16 = vpop.f32.mrb[74].mxu0 }
 0xcbd   : > { %v2317_v17 = vpack.c.bf16 %v2313_v16, %v2310_v13  ;;  %v4647_v18 = vpop.f32.mrb[75].mxu0 }
 0xcbf   : > { %4653 = vmatmul.mubr.msk.bf16.vlgmr.msra.gmra.mrb[68].mxu1 %vm785_vm3, %v2317_v17 }
 0xcc0   : > { %4657 = vmatpush3.bf16.msra.mxu1 %v5125_v45  ;;  %4670 = vmatprep.mubr.msk.bf16.mxu1 %vm4984_vm0, %v4983_v31  ;;  %v4936_v45 = vld [vmem:[%s5901_s3 + $0x78] sm:$0xff]  }
 0xcc1   : > { %4658 = vmatprep.subr.bf16.mxu1 %v4983_v31 }
 0xcc4   : > { %4659 = vmatpush3.bf16.msra.mxu1 %v5133_v56  ;;  %v4937_v56 = vld [vmem:[%s5902_s4 + $0xf0] sm:$0xff]  }
 0xcc5   : > { %4660 = vmatprep.subr.bf16.mxu1 %v4983_v31  ;;  %4675 = vmatpush3.bf16.msra.mxu0 %v4937_v56 }
 0xcc6   : > { %4676 = vmatprep.subr.bf16.mxu0 %v4983_v31 }
 0xcc8   : > { %4661 = vmatpush3.bf16.msra.mxu1 %v5141_v3  ;;  %v4938_v3 = vld [vmem:[%s5902_s4 + $0xf8] sm:$0xff]  }
 0xcc9   : > { %4662 = vmatprep.subr.bf16.mxu1 %v4983_v31  ;;  %4677 = vmatpush3.bf16.msra.mxu0 %v4938_v3 }
 0xcca   : > { %4682 = vmatprep.subr.bf16.mxu0 %v4983_v31 }
 0xccc   : > { %4663 = vmatpush3.bf16.msra.mxu1 %v5149_v14 }
 0xccd   : > { %4664 = vmatprep.subr.bf16.mxu1 %v4983_v31 }
 0xcd0   : > { %4665 = vmatpush3.bf16.msra.mxu1 %v5157_v25 }
 0xcd1   : > { %4666 = vmatprep.subr.bf16.mxu1 %v4983_v31 }
 0xcd4   : > { %4667 = vmatpush3.bf16.msra.mxu1 %v5165_v38 }
 0xcd5   : > { %4668 = vmatprep.subr.bf16.mxu1 %v4983_v31 }
 0xcd8   : > { %4669 = vmatpush3.bf16.msra.mxu1 %v5172_v46 }
 0xcd9   : > { %4694 = vmatprep.subr.bf16.mxu1 %v4983_v31 }
 0xcdb   : > { %4671 = vmatmul.mubr.msk.bf16.vlgmr.msra.gmra.mrb[72].mxu1 %vm662_vm2, %v4936_v45 }
 0xcdc   : > { %4702 = vmatprep.mubr.msk.bf16.mxu1 %vm4984_vm0, %v4983_v31  ;;  %4695 = vmatpush3.bf16.msra.mxu1 %v4941_v27  ;;  %v4956_v27 = vld [vmem:[%s5905_s7 + $0x88] sm:$0xff]  }
 0xcdd   : > { %4696 = vmatprep.subr.bf16.mxu1 %v4983_v31 }
 0xce0   : > { %4697 = vmatpush3.bf16.msra.mxu1 %v4943_v28  ;;  %v3117_v28 = vld [vmem:[%s5904_s6 + $0x14] sm:$0xf] }
 0xce1   : > { %4698 = vmatprep.subr.bf16.mxu1 %v4983_v31 }
 0xce4   : > { %4699 = vmatpush3.bf16.msra.mxu1 %v4945_v51 }
 0xce5   : > { %4700 = vmatprep.subr.bf16.mxu1 %v4983_v31 }
 0xce8   : > { %4701 = vmatpush3.bf16.msra.mxu1 %v4946_v52 }
 0xce9   : > { %4718 = vmatprep.subr.bf16.mxu1 %v4983_v31 }
 0xd92   : > { %v2372_v14 = vpop.f32.mrb[68].mxu1 }
 0xd93   : > { %v2379_v25 = vadd.f32 %v2372_v14, %v2264_v8  ;;  %v4654_v38 = vpop.f32.mrb[69].mxu1  ;;  %v4952_v8 = vld [vmem:[%s5905_s7 + $0x68] sm:$0xff]  }
 0xd94   : > { %v2375_v46 = vpop.f32.mrb[70].mxu1 }
 0xd95   : > { %v2380_v19 = vadd.f32 %v2375_v46, %v2265_v11  ;;  %v4655_v20 = vpop.f32.mrb[71].mxu1 }
 0xd96   : > { %v2995_v20 = vld [vmem:[%s5904_s6 + $0x10] sm:$0xf] }
 0xdae   : > { %v2425_v21 = vpop.f32.mrb[72].mxu1 }
 0xdaf   : > { %v4672_v22 = vpop.f32.mrb[73].mxu1 }
 0xdb0   : > { %v2428_v23 = vpop.f32.mrb[74].mxu1  ;;  %v4955_v22 = vld [vmem:[%s5905_s7 + $0x80] sm:$0xff]  }
 0xdb1   : > { %v2432_v24 = vpack.c.bf16 %v2428_v23, %v2425_v21  ;;  %v4673_v26 = vpop.f32.mrb[75].mxu1 }
 0xdb3   : > { %4679 = vmatmul.mubr.msk.bf16.vlgmr.msra.gmra.mrb[76].mxu0 %vm785_vm3, %v2432_v24 }
 0xdb4   : > { %4684 = vmatprep.mubr.msk.bf16.mxu0 %vm4984_vm0, %v4983_v31 }
 0xe86   : > { %v2487_v29 = vpop.f32.mrb[76].mxu0 }
 0xe87   : > { %v2494_v32 = vadd.f32 %v2487_v29, %v2379_v25  ;;  %v4680_v34 = vpop.f32.mrb[77].mxu0  ;;  %v4957_v29 = vld [vmem:[%s5905_s7 + $0x90] sm:$0xff]  }
 0xe88   : > { %v2490_v35 = vpop.f32.mrb[78].mxu0  ;;  %v4960_v34 = vld [vmem:[%s5905_s7 + $0xa8] sm:$0xff]  }
 0xe89   : > { %v2503_v36 = vadd.f32 %v3847_v30, %v2494_v32  ;;  %v2495_v37 = vadd.f32 %v2490_v35, %v2380_v19  ;;  %v4681_v39 = vpop.f32.mrb[79].mxu0  ;;  %v4959_v32 = vld [vmem:[%s5905_s7 + $0x98] sm:$0xff]   ;;  %v4961_v35 = vld [vmem:[%s5905_s7 + $0xb0] sm:$0xff]  }
 0xe8b   : > { %v2504_v40 = vadd.f32 %v3847_v30, %v2495_v37  ;;  %v2505_v41 = vmax.f32 %v2503_v36, 0.0  ;;  %v4958_v30 = vld [vmem:[%s5905_s7 + $0xa0] sm:$0xff]   ;;  %v4962_v36 = vld [vmem:[%s5905_s7 + $0xb8] sm:$0xff]  }
 0xe8d   : > { %v2506_v42 = vmax.f32 %v2504_v40, 0.0 }
 0xe8f   : > { %v5657_v43 = vpack.c.bf16 %v2506_v42, %v2505_v41 }
 0xe91   : > { %4683 = vmatpush3.bf16.msra.mxu0 %v5657_v43 }
 0xe92   : > { %4688 = vmatprep.subr.bf16.mxu0 %v4983_v31 }
 0xe94   : > { %4685 = vmatmul.mubr.msk.bf16.vlgmr.msra.gmra.mrb[80].mxu0 %vm2509_vm4, %v2508_v44 }
 0xe95   : > { %4689 = vmatpush3.bf16.msra.mxu0 %v5657_v43  ;;  %4690 = vmatprep.mubr.msk.bf16.mxu0 %vm4984_vm0, %v4983_v31 }
 0xe96   : > { %4706 = vmatprep.subr.bf16.mxu0 %v4983_v31 }
 0xe9c   : > { %4691 = vmatmul.mubr.msk.bf16.vlgmr.msra.gmra.mrb[84].mxu0 %vm2509_vm4, %v2562_v47 }
 0xe9d   : > { %4707 = vmatpush3.bf16.msra.mxu0 %v4939_v33  ;;  %4714 = vmatprep.mubr.msk.bf16.mxu0 %vm4984_vm0, %v4983_v31 }
 0xe9e   : > { %4708 = vmatprep.subr.bf16.mxu0 %v4983_v31 }
 0xea1   : > { %4709 = vmatpush3.bf16.msra.mxu0 %v4940_v48 }
 0xea2   : > { %4710 = vmatprep.subr.bf16.mxu0 %v4983_v31 }
 0xea5   : > { %4711 = vmatpush3.bf16.msra.mxu0 %v4942_v49 }
 0xea6   : > { %4712 = vmatprep.subr.bf16.mxu0 %v4983_v31 }
 0xea9   : > { %4713 = vmatpush3.bf16.msra.mxu0 %v4944_v50 }
 0xeaa   : > { %4724 = vmatprep.subr.bf16.mxu0 %v4983_v31 }
 0xf67   : > { %v2547_v53 = vpop.f32.mrb[80].mxu0 }
 0xf68   : > { %v2553_v54 = vpack.c.bf16 %v2547_v53, %v2547_v53  ;;  %v4686_v55 = vpop.f32.mrb[81].mxu0 }
 0xf69   : > { %v2550_v57 = vpop.f32.mrb[82].mxu0 }
 0xf6a   : > { %v4687_v58 = vpop.f32.mrb[83].mxu0  ;;  %4715 = vmatmul.mubr.msk.bf16.vlgmr.msra.gmra.mrb[88].mxu0 %vm2640_vm5, %v2553_v54  ;;  %v3239_v57 = vld [vmem:[%s5904_s6 + $0x18] sm:$0xf] }
 0xf6b   : > { %4732 = vmatprep.mubr.msk.bf16.mxu0 %vm4984_vm0, %v4983_v31  ;;  %4725 = vmatpush3.bf16.msra.mxu0 %v4947_v2  ;;  %v4966_v2 = vld [vmem:[%s5905_s7 + $0xe0] sm:$0xff]  }
 0xf6c   : > { %4726 = vmatprep.subr.bf16.mxu0 %v4983_v31 }
 0xf6f   : > { %v2600_v59 = vpop.f32.mrb[84].mxu0  ;;  %4727 = vmatpush3.bf16.msra.mxu0 %v4948_v4  ;;  %v4967_v4 = vld [vmem:[%s5905_s7 + $0xd8] sm:$0xff]  }
 0xf70   : > { %v2606_v60 = vpack.c.bf16 %v2600_v59, %v2600_v59  ;;  %v4692_v61 = vpop.f32.mrb[85].mxu0  ;;  %4728 = vmatprep.subr.bf16.mxu0 %v4983_v31  ;;  %v4963_v59 = vld [vmem:[%s5905_s7 + $0xc0] sm:$0xff]  }
 0xf71   : > { %v2603_v62 = vpop.f32.mrb[86].mxu0 }
 0xf72   : > { %4703 = vmatmul.mubr.msk.bf16.vlgmr.msra.gmra.mrb[76].mxu1 %vm2640_vm5, %v2606_v60  ;;  %v4693_v63 = vpop.f32.mrb[87].mxu0 }
 0xf73   : > { %4719 = vmatpush3.bf16.msra.mxu1 %v5657_v43  ;;  %4720 = vmatprep.mubr.msk.bf16.mxu1 %vm4984_vm0, %v4983_v31  ;;  %v4964_v63 = vld [vmem:[%s5905_s7 + $0xc8] sm:$0xff]  }
 0xf74   : > { %4736 = vmatprep.subr.bf16.mxu1 %v4983_v31  ;;  %4729 = vmatpush3.bf16.msra.mxu0 %v4949_v5  ;;  %v4968_v5 = vld [vmem:[%s5905_s7 + $0xe8] sm:$0xff]  }
 0xf75   : > { %4730 = vmatprep.subr.bf16.mxu0 %v4983_v31 }
 0xf78   : > { %4731 = vmatpush3.bf16.msra.mxu0 %v4951_v7  ;;  %v4970_v7 = vld [vmem:[%s5905_s7 + $0xf8] sm:$0xff]  }
 0xf79   : > { %4754 = vmatprep.subr.bf16.mxu0 %v4983_v31 }
 0xf7a   : > { %4721 = vmatmul.mubr.msk.bf16.vlgmr.msra.gmra.mrb[80].mxu1 %vm2509_vm4, %v2751_v0  ;;  %v3361_v0 = vld [vmem:[%s5904_s6 + $0x1c] sm:$0xf] }
 0xf7b   : > { %4737 = vmatpush3.bf16.msra.mxu1 %v5657_v43  ;;  %4738 = vmatprep.mubr.msk.bf16.mxu1 %vm4984_vm0, %v4983_v31 }
 0xf7c   : > { %4742 = vmatprep.subr.bf16.mxu1 %v4983_v31 }
 0xf82   : > { %4739 = vmatmul.mubr.msk.bf16.vlgmr.msra.gmra.mrb[84].mxu1 %vm2509_vm4, %v2873_v1  ;;  %v4965_v1 = vld [vmem:[%s5905_s7 + $0xd0] sm:$0xff]  }
 0xf83   : > { %4750 = vmatprep.mubr.msk.bf16.mxu1 %vm4984_vm0, %v4983_v31  ;;  %4743 = vmatpush3.bf16.msra.mxu1 %v4950_v6  ;;  %v4969_v6 = vld [vmem:[%s5905_s7 + $0xf0] sm:$0xff]  }
 0xf84   : > { %4744 = vmatprep.subr.bf16.mxu1 %v4983_v31 }
 0xf87   : > { %4745 = vmatpush3.bf16.msra.mxu1 %v4952_v8 }
 0xf88   : > { %4746 = vmatprep.subr.bf16.mxu1 %v4983_v31 }
 0xf8b   : > { %4747 = vmatpush3.bf16.msra.mxu1 %v4953_v9 }
 0xf8c   : > { %4748 = vmatprep.subr.bf16.mxu1 %v4983_v31 }
 0xf8f   : > { %4749 = vmatpush3.bf16.msra.mxu1 %v4954_v10 }
 0xf90   : > { %4772 = vmatprep.subr.bf16.mxu1 %v4983_v31 }
0x103d   : > { %v2745_v11 = vpop.f32.mrb[88].mxu0 }
0x103e   : > { %v4716_v12 = vpop.f32.mrb[89].mxu0 }
0x103f   : > { %v2748_v13 = vpop.f32.mrb[90].mxu0 }
0x1040   : > { %v4717_v15 = vpop.f32.mrb[91].mxu0 }
0x1045   : > { %v2678_v16 = vpop.f32.mrb[76].mxu1 }
0x1046   : > { %v2746_v17 = vadd.f32 %v2745_v11, %v2678_v16  ;;  %v4704_v18 = vpop.f32.mrb[77].mxu1 }
0x1047   : > { %v2681_v45 = vpop.f32.mrb[78].mxu1 }
0x1048   : > { %v4705_v56 = vpop.f32.mrb[79].mxu1 }
0x104d   : > { %v2789_v3 = vpop.f32.mrb[80].mxu1 }
0x104e   : > { %v2795_v14 = vpack.c.bf16 %v2789_v3, %v2789_v3  ;;  %v4722_v25 = vpop.f32.mrb[81].mxu1 }
0x104f   : > { %v2792_v38 = vpop.f32.mrb[82].mxu1 }
0x1050   : > { %4733 = vmatmul.mubr.msk.bf16.vlgmr.msra.gmra.mrb[92].mxu0 %vm2640_vm5, %v2795_v14  ;;  %v4723_v46 = vpop.f32.mrb[83].mxu1 }
0x1051   : > { %4755 = vmatpush3.bf16.msra.mxu0 %v5657_v43  ;;  %4756 = vmatprep.mubr.msk.bf16.mxu0 %vm4984_vm0, %v4983_v31  ;;  %v3483_v46 = vld [vmem:[%s5904_s6 + $0x20] sm:$0xf] }
0x1052   : > { %4760 = vmatprep.subr.bf16.mxu0 %v4983_v31 }
0x1055   : > { %v2911_v19 = vpop.f32.mrb[84].mxu1 }
0x1056   : > { %v2917_v21 = vpack.c.bf16 %v2911_v19, %v2911_v19  ;;  %v4740_v23 = vpop.f32.mrb[85].mxu1  ;;  %v4971_v19 = vld [vmem:[%s5905_s7 + $0x100] sm:$0xff]  }
0x1057   : > { %v2914_v24 = vpop.f32.mrb[86].mxu1  ;;  %v4972_v23 = vld [vmem:[%s5905_s7 + $0x108] sm:$0xff]  }
0x1058   : > { %4751 = vmatmul.mubr.msk.bf16.vlgmr.msra.gmra.mrb[88].mxu1 %vm2640_vm5, %v2917_v21  ;;  %4757 = vmatmul.mubr.msk.bf16.vlgmr.msra.gmra.mrb[96].mxu0 %vm2509_vm4, %v2995_v20  ;;  %v4741_v26 = vpop.f32.mrb[87].mxu1  ;;  %v4973_v24 = vld [vmem:[%s5905_s7 + $0x110] sm:$0xff]  }
0x1059   : > { %4773 = vmatpush3.bf16.msra.mxu1 %v5657_v43  ;;  %4774 = vmatprep.mubr.msk.bf16.mxu1 %vm4984_vm0, %v4983_v31  ;;  %v4974_v26 = vld [vmem:[%s5905_s7 + $0x118] sm:$0xff]  }
0x105a   : > { %4761 = vmatpush3.bf16.msra.mxu0 %v4955_v22  ;;  %4778 = vmatprep.subr.bf16.mxu1 %v4983_v31 }
0x105b   : > { %4762 = vmatprep.subr.bf16.mxu0 %v4983_v31  ;;  %4768 = vmatprep.mubr.msk.bf16.mxu0 %vm4984_vm0, %v4983_v31 }
0x105e   : > { %4763 = vmatpush3.bf16.msra.mxu0 %v4956_v27 }
0x105f   : > { %4764 = vmatprep.subr.bf16.mxu0 %v4983_v31 }
0x1060   : > { %4775 = vmatmul.mubr.msk.bf16.vlgmr.msra.gmra.mrb[92].mxu1 %vm2509_vm4, %v3117_v28 }
0x1061   : > { %4786 = vmatprep.mubr.msk.bf16.mxu1 %vm4984_vm0, %v4983_v31  ;;  %4779 = vmatpush3.bf16.msra.mxu1 %v4958_v30 }
0x1062   : > { %4765 = vmatpush3.bf16.msra.mxu0 %v4957_v29  ;;  %4780 = vmatprep.subr.bf16.mxu1 %v4983_v31 }
0x1063   : > { %4766 = vmatprep.subr.bf16.mxu0 %v4983_v31 }
0x1065   : > { %4781 = vmatpush3.bf16.msra.mxu1 %v4960_v34 }
0x1066   : > { %4767 = vmatpush3.bf16.msra.mxu0 %v4959_v32  ;;  %4782 = vmatprep.subr.bf16.mxu1 %v4983_v31 }
0x1067   : > { %4790 = vmatprep.subr.bf16.mxu0 %v4983_v31 }
0x1069   : > { %4783 = vmatpush3.bf16.msra.mxu1 %v4961_v35 }
0x106a   : > { %4784 = vmatprep.subr.bf16.mxu1 %v4983_v31 }
0x106d   : > { %4785 = vmatpush3.bf16.msra.mxu1 %v4962_v36 }
0x106e   : > { %4808 = vmatprep.subr.bf16.mxu1 %v4983_v31 }
0x1123   : > { %v2866_v37 = vpop.f32.mrb[92].mxu0 }
0x1124   : > { %v2872_v39 = vadd.f32 %v2866_v37, %v2746_v17  ;;  %v4734_v40 = vpop.f32.mrb[93].mxu0 }
0x1125   : > { %v2869_v41 = vpop.f32.mrb[94].mxu0 }
0x1126   : > { %v4735_v42 = vpop.f32.mrb[95].mxu0 }
0x112b   : > { %v2988_v44 = vpop.f32.mrb[88].mxu1  ;;  %v3033_v47 = vpop.f32.mrb[96].mxu0 }
0x112c   : > { %v2994_v33 = vadd.f32 %v2988_v44, %v2872_v39  ;;  %v3039_v48 = vpack.c.bf16 %v3033_v47, %v3033_v47  ;;  %v4758_v49 = vpop.f32.mrb[97].mxu0  ;;  %v4752_v50 = vpop.f32.mrb[89].mxu1 }
0x112d   : > { %v3036_v51 = vpop.f32.mrb[98].mxu0  ;;  %v2991_v52 = vpop.f32.mrb[90].mxu1 }
0x112e   : > { %4769 = vmatmul.mubr.msk.bf16.vlgmr.msra.gmra.mrb[100].mxu0 %vm2640_vm5, %v3039_v48  ;;  %v4759_v53 = vpop.f32.mrb[99].mxu0  ;;  %v4753_v54 = vpop.f32.mrb[91].mxu1 }
0x112f   : > { %4791 = vmatpush3.bf16.msra.mxu0 %v5657_v43  ;;  %4792 = vmatprep.mubr.msk.bf16.mxu0 %vm4984_vm0, %v4983_v31 }
0x1130   : > { %4796 = vmatprep.subr.bf16.mxu0 %v4983_v31 }
0x1133   : > { %v3155_v55 = vpop.f32.mrb[92].mxu1 }
0x1134   : > { %v3161_v58 = vpack.c.bf16 %v3155_v55, %v3155_v55  ;;  %v4776_v60 = vpop.f32.mrb[93].mxu1 }
0x1135   : > { %v3158_v61 = vpop.f32.mrb[94].mxu1 }
0x1136   : > { %4787 = vmatmul.mubr.msk.bf16.vlgmr.msra.gmra.mrb[96].mxu1 %vm2640_vm5, %v3161_v58  ;;  %4793 = vmatmul.mubr.msk.bf16.vlgmr.msra.gmra.mrb[104].mxu0 %vm2509_vm4, %v3239_v57  ;;  %v4777_v62 = vpop.f32.mrb[95].mxu1 }
0x1137   : > { %4809 = vmatpush3.bf16.msra.mxu1 %v5657_v43  ;;  %4810 = vmatprep.mubr.msk.bf16.mxu1 %vm4984_vm0, %v4983_v31 }
0x1138   : > { %4797 = vmatpush3.bf16.msra.mxu0 %v4963_v59  ;;  %4814 = vmatprep.subr.bf16.mxu1 %v4983_v31 }
0x1139   : > { %4798 = vmatprep.subr.bf16.mxu0 %v4983_v31  ;;  %4804 = vmatprep.mubr.msk.bf16.mxu0 %vm4984_vm0, %v4983_v31 }
0x113c   : > { %4799 = vmatpush3.bf16.msra.mxu0 %v4964_v63 }
0x113d   : > { %4800 = vmatprep.subr.bf16.mxu0 %v4983_v31 }
0x113e   : > { %4811 = vmatmul.mubr.msk.bf16.vlgmr.msra.gmra.mrb[100].mxu1 %vm2509_vm4, %v3361_v0 }
0x113f   : > { %4822 = vmatprep.mubr.msk.bf16.mxu1 %vm4984_vm0, %v4983_v31  ;;  %4815 = vmatpush3.bf16.msra.mxu1 %v4966_v2 }
0x1140   : > { %4801 = vmatpush3.bf16.msra.mxu0 %v4965_v1  ;;  %4816 = vmatprep.subr.bf16.mxu1 %v4983_v31 }
0x1141   : > { %4802 = vmatprep.subr.bf16.mxu0 %v4983_v31 }
0x1143   : > { %4817 = vmatpush3.bf16.msra.mxu1 %v4968_v5 }
0x1144   : > { %4803 = vmatpush3.bf16.msra.mxu0 %v4967_v4  ;;  %4818 = vmatprep.subr.bf16.mxu1 %v4983_v31 }
0x1145   : > { %4826 = vmatprep.subr.bf16.mxu0 %v4983_v31 }
0x1147   : > { %4819 = vmatpush3.bf16.msra.mxu1 %v4969_v6 }
0x1148   : > { %4820 = vmatprep.subr.bf16.mxu1 %v4983_v31 }
0x114b   : > { %4821 = vmatpush3.bf16.msra.mxu1 %v4970_v7 }
0x1201   : > { %v3110_v8 = vpop.f32.mrb[100].mxu0 }
0x1202   : > { %v3116_v9 = vadd.f32 %v3110_v8, %v2994_v33  ;;  %v4770_v10 = vpop.f32.mrb[101].mxu0  ;;  %v3966_v33 = vld [vmem:[%s5906_s8] ss:$0 sm:$0xff] }
0x1203   : > { %v3113_v11 = vpop.f32.mrb[102].mxu0 }
0x1204   : > { %v4771_v12 = vpop.f32.mrb[103].mxu0 }
0x1209   : > { %v3232_v13 = vpop.f32.mrb[96].mxu1  ;;  %v3277_v15 = vpop.f32.mrb[104].mxu0 }
0x120a   : > { %v3238_v16 = vadd.f32 %v3232_v13, %v3116_v9  ;;  %v3283_v17 = vpack.c.bf16 %v3277_v15, %v3277_v15  ;;  %v4794_v18 = vpop.f32.mrb[105].mxu0  ;;  %v4788_v45 = vpop.f32.mrb[97].mxu1 }
0x120b   : > { %v3280_v56 = vpop.f32.mrb[106].mxu0  ;;  %v3235_v3 = vpop.f32.mrb[98].mxu1 }
0x120c   : > { %4805 = vmatmul.mubr.msk.bf16.vlgmr.msra.gmra.mrb[108].mxu0 %vm2640_vm5, %v3283_v17  ;;  %v4795_v14 = vpop.f32.mrb[107].mxu0  ;;  %v4789_v25 = vpop.f32.mrb[99].mxu1 }
0x120d   : > { %4827 = vmatpush3.bf16.msra.mxu0 %v5657_v43  ;;  %4828 = vmatprep.mubr.msk.bf16.mxu0 %vm4984_vm0, %v4983_v31 }
0x120e   : > { %4832 = vmatprep.subr.bf16.mxu0 %v4983_v31 }
0x1211   : > { %v3399_v38 = vpop.f32.mrb[100].mxu1 }
0x1212   : > { %v3405_v20 = vpack.c.bf16 %v3399_v38, %v3399_v38  ;;  %v4812_v21 = vpop.f32.mrb[101].mxu1 }
0x1213   : > { %v3402_v22 = vpop.f32.mrb[102].mxu1 }
0x1214   : > { %4823 = vmatmul.mubr.msk.bf16.vlgmr.msra.gmra.mrb[104].mxu1 %vm2640_vm5, %v3405_v20  ;;  %4829 = vmatmul.mubr.msk.bf16.vlgmr.msra.gmra.mrb[112].mxu0 %vm2509_vm4, %v3483_v46  ;;  %v4813_v43 = vpop.f32.mrb[103].mxu1 }
0x1215   : > { %4833 = vmatpush3.bf16.msra.mxu0 %v4971_v19  ;;  %4840 = vmatprep.mubr.msk.bf16.mxu0 %vm4984_vm0, %v4983_v31 }
0x1216   : > { %4834 = vmatprep.subr.bf16.mxu0 %v4983_v31 }
0x1219   : > { %4835 = vmatpush3.bf16.msra.mxu0 %v4972_v23 }
0x121a   : > { %4836 = vmatprep.subr.bf16.mxu0 %v4983_v31 }
0x121d   : > { %4837 = vmatpush3.bf16.msra.mxu0 %v4973_v24 }
0x121e   : > { %4838 = vmatprep.subr.bf16.mxu0 %v4983_v31 }
0x1221   : > { %4839 = vmatpush3.bf16.msra.mxu0 %v4974_v26 }
0x12df   : > { %v3354_v27 = vpop.f32.mrb[108].mxu0 }
0x12e0   : > { %v3360_v28 = vadd.f32 %v3354_v27, %v3238_v16  ;;  %v4806_v29 = vpop.f32.mrb[109].mxu0 }
0x12e1   : > { %v3357_v30 = vpop.f32.mrb[110].mxu0 }
0x12e2   : > { %v4807_v32 = vpop.f32.mrb[111].mxu0 }
0x12e7   : > { %v3476_v34 = vpop.f32.mrb[104].mxu1  ;;  %v3521_v35 = vpop.f32.mrb[112].mxu0 }
0x12e8   : > { %v3482_v36 = vadd.f32 %v3476_v34, %v3360_v28  ;;  %v3527_v37 = vpack.c.bf16 %v3521_v35, %v3521_v35  ;;  %v4830_v39 = vpop.f32.mrb[113].mxu0  ;;  %v4824_v40 = vpop.f32.mrb[105].mxu1 }
0x12e9   : > { %v3524_v41 = vpop.f32.mrb[114].mxu0  ;;  %v3479_v42 = vpop.f32.mrb[106].mxu1 }
0x12ea   : > { %4841 = vmatmul.mubr.msk.bf16.vlgmr.msra.gmra.mrb[116].mxu0 %vm2640_vm5, %v3527_v37  ;;  %v4831_v31 = vpop.f32.mrb[115].mxu0  ;;  %v4825_v44 = vpop.f32.mrb[107].mxu1 }
0x13bd   : > { %v3598_v47 = vpop.f32.mrb[116].mxu0 }
0x13be   : > { %v3604_v48 = vadd.f32 %v3598_v47, %v3482_v36  ;;  %v4842_v49 = vpop.f32.mrb[117].mxu0 }
0x13bf   : > { %v3601_v50 = vpop.f32.mrb[118].mxu0 }
0x13c0   : > { %v3612_v51 = vadd.f32 %v3966_v33, %v3604_v48  ;;  %v4843_v52 = vpop.f32.mrb[119].mxu0 }
0x13c2   : > { %v3613_v53 = vmax.f32 %v3612_v51, 0.0 }
0x13c4   : > { %3615 = vst.msk [vmem:[%s330_s14] sm:$0xf] %vm3614_vm6, %v3613_v53 }
0x13c5 PF: > { %s19_s30 = sadd.s32 1, %s4981_s30  }
0x13c6   : > { %p16_p4 = scmp.ge.s32.totalorder %s19_s30, 4  }
0x13c8   :  { %18 = sbr.rel (!%p16_p4) target bundleno = 1 (0x1), region = 109 }

</bundles_post_ra>
